<compile_context>
chip_gen: v7x
topology: tpu7x:2x2x1
jax: 0.10.0
libtpu: 0.0.40
codegen_flags: <defaults>
</compile_context>

<pallas_src>
import jax
import jax.numpy as jnp
from jax.experimental import pallas as pl
from jax.experimental.pallas import tpu as pltpu


# ----------------------------------------------------------------------------
# Pallas kernels
# ----------------------------------------------------------------------------
def conv_bn_relu_kernel(p_ref, w_ref, bias_ref, o_ref):
    """(tile_m, K) @ (K, Cout); BN scale is pre-folded into the weights.

    Matmul inputs are bf16 (MXU native); accumulation and the bias/ReLU
    epilogue are f32; the output is stored as bf16 for the next layer.
    """
    y = jnp.dot(p_ref[...], w_ref[...], preferred_element_type=jnp.float32)
    y = jnp.maximum(y + bias_ref[...], 0.0)
    o_ref[...] = y.astype(o_ref.dtype)


def linear_l2norm_kernel(x_ref, w_ref, b_ref, o_ref):
    """y = x @ W + b, then row-wise L2 normalization (rsqrt on the EUP)."""
    y = jnp.dot(x_ref[...], w_ref[...], preferred_element_type=jnp.float32)
    y = y + b_ref[...]
    inv = jax.lax.rsqrt(jnp.sum(y * y, axis=1, keepdims=True) + 1e-12)
    o_ref[...] = (y * inv).astype(o_ref.dtype)


# ----------------------------------------------------------------------------
# Helpers
# ----------------------------------------------------------------------------
def _cdiv(a, b):
    return -(-a // b)


def _round_up(a, m):
    return _cdiv(a, m) * m


def _row_tiling(m, max_tile=2048):
    """Row tile for the 1-D grid.

    Tiny m: one full block (block dim == array dim, always legal).
    Otherwise: >= 2 blocks (so v7x's two TensorCores both get work), tiles
    128-aligned for large m / 16-aligned (bf16 sublane pack) for medium m,
    capped at `max_tile` rows to keep double-buffered VMEM small.
    """
    if m <= 256:
        return m, 1, m
    n_blocks = max(2, _cdiv(m, max_tile))
    align = 128 if m >= 1024 else 16
    tile = _round_up(_cdiv(m, n_blocks), align)
    n_blocks = _cdiv(m, tile)
    return tile, n_blocks, tile * n_blocks


def _conv_out_size(size, k=5, s=2):
    return (size - (k - 1) - 1) // s + 1


def _im2col(x_nhwc, k, stride):
    """Extract conv patches. Output (N, Ho, Wo, k*k*Cin), inner order (ki, kj, c)."""
    n, h, w, c = x_nhwc.shape
    ho = _conv_out_size(h, k, stride)
    wo = _conv_out_size(w, k, stride)
    cols = []
    for i in range(k):
        for j in range(k):
            cols.append(
                x_nhwc[:, i:i + stride * ho:stride, j:j + stride * wo:stride, :]
            )
    patches = jnp.stack(cols, axis=-2)              # (N, Ho, Wo, k*k, C)
    return patches.reshape(n, ho, wo, k * k * c), ho, wo


_COMPILER_PARAMS = pltpu.CompilerParams(
    dimension_semantics=("parallel",),
    vmem_limit_bytes=32 * 1024 * 1024)


# ----------------------------------------------------------------------------
# Per-layer wrappers (activation-side glue only; all weights are pre-prepped)
# ----------------------------------------------------------------------------
def conv_bn_relu(x_nhwc, w2d, bias_eff, k=5, stride=2):
    """x_nhwc: bf16 (N,H,W,Cin).  w2d: bf16 (k*k*Cin, Cout), BN scale folded.
    bias_eff: f32 (1, Cout).  Returns bf16 (N, Ho, Wo, Cout)."""
    n = x_nhwc.shape[0]
    kdim, cout = w2d.shape
    patches, ho, wo = _im2col(x_nhwc, k, stride)

    m = n * ho * wo
    tile_m, n_blocks, m_pad = _row_tiling(m)

    p2d = patches.reshape(m, kdim)                   # bf16, K left unpadded
    if m_pad != m:
        p2d = jnp.pad(p2d, ((0, m_pad - m), (0, 0)))

    out2d = pl.pallas_call(
        conv_bn_relu_kernel,
        out_shape=jax.ShapeDtypeStruct((m_pad, cout), jnp.bfloat16),
        grid=(n_blocks,),
        in_specs=[
            pl.BlockSpec((tile_m, kdim), lambda i: (i, 0)),
            pl.BlockSpec((kdim, cout), lambda i: (0, 0)),
            pl.BlockSpec((1, cout), lambda i: (0, 0)),
        ],
        out_specs=pl.BlockSpec((tile_m, cout), lambda i: (i, 0)),
        compiler_params=_COMPILER_PARAMS,
        cost_estimate=pl.CostEstimate(
            flops=2 * m_pad * kdim * cout,
            transcendentals=0,
            bytes_accessed=(m_pad * kdim * 2 + kdim * cout * 2
                            + cout * 4 + m_pad * cout * 2)),
    )(p2d, w2d, bias_eff)

    return out2d[:m].reshape(n, ho, wo, cout)


def linear_l2norm(x_flat, w2d, b2d):
    """x_flat: bf16 (N, Fin).  w2d: bf16 (Fin, Fout).  b2d: f32 (1, Fout)."""
    n, fin = x_flat.shape
    fout = w2d.shape[1]
    tile_n, n_blocks, n_pad = _row_tiling(n)

    x2d = x_flat
    if n_pad != n:
        x2d = jnp.pad(x2d, ((0, n_pad - n), (0, 0)))

    out = pl.pallas_call(
        linear_l2norm_kernel,
        out_shape=jax.ShapeDtypeStruct((n_pad, fout), jnp.float32),
        grid=(n_blocks,),
        in_specs=[
            pl.BlockSpec((tile_n, fin), lambda i: (i, 0)),
            pl.BlockSpec((fin, fout), lambda i: (0, 0)),
            pl.BlockSpec((1, fout), lambda i: (0, 0)),
        ],
        out_specs=pl.BlockSpec((tile_n, fout), lambda i: (i, 0)),
        compiler_params=_COMPILER_PARAMS,
        cost_estimate=pl.CostEstimate(
            flops=2 * n_pad * fin * fout,
            transcendentals=n_pad,
            bytes_accessed=(n_pad * fin * 2 + fin * fout * 2
                            + fout * 4 + n_pad * fout * 4)),
    )(x2d, w2d, b2d)
    return out[:n]


# ----------------------------------------------------------------------------
# One-time parameter preparation (outside the jitted forward)
# ----------------------------------------------------------------------------
def prepare_params(params, h, w, eps=1e-5):
    """Fold BN into conv weights/bias, permute the linear weight to the NHWC
    flatten order, cast matmul operands to bf16.  Call once, reuse forever."""
    def conv_prep(w_oihw, conv_b, gamma, beta, mean, var):
        cout, cin, kh, kw = w_oihw.shape
        scale = gamma / jnp.sqrt(var + eps)
        # (Cout, Cin, KH, KW) -> (KH, KW, Cin, Cout) -> (K, Cout), scale folded.
        w2d = jnp.transpose(w_oihw, (2, 3, 1, 0)).reshape(kh * kw * cin, cout)
        w2d = (w2d * scale[None, :]).astype(jnp.bfloat16)
        bias_eff = ((conv_b - mean) * scale + beta).reshape(1, cout)
        return w2d, bias_eff.astype(jnp.float32)

    wc1, bc1 = conv_prep(params["w1"], params["b1"], params["g1"],
                         params["be1"], params["m1"], params["v1"])
    wc2, bc2 = conv_prep(params["w2"], params["b2"], params["g2"],
                         params["be2"], params["m2"], params["v2"])
    wc3, bc3 = conv_prep(params["w3"], params["b3"], params["g3"],
                         params["be3"], params["m3"], params["v3"])

    # PyTorch flattens activations in NCHW order; our activations are NHWC.
    # Fold the permutation into the linear weight columns once:
    #   (Fout, C*Ho*Wo) -> (Fout, C, Ho, Wo) -> (Fout, Ho, Wo, C) -> (Fin, Fout)
    convw = _conv_out_size(_conv_out_size(_conv_out_size(w)))
    convh = _conv_out_size(_conv_out_size(_conv_out_size(h)))
    c3 = params["w3"].shape[0]
    wl = params["wl"].reshape(-1, c3, convh, convw)
    fout = wl.shape[0]
    wl = jnp.transpose(wl, (0, 2, 3, 1)).reshape(fout, convh * convw * c3)
    wl = jnp.transpose(wl).astype(jnp.bfloat16)            # (Fin, Fout)
    bl = params["bl"].reshape(1, fout).astype(jnp.float32)

    return {"wc1": wc1, "bc1": bc1, "wc2": wc2, "bc2": bc2,
            "wc3": wc3, "bc3": bc3, "wl": wl, "bl": bl}


@jax.jit
def encoder_forward(x_nchw, prep):
    # NCHW -> NHWC, cast to bf16 once so patches are built/moved in bf16.
    x = jnp.transpose(x_nchw, (0, 2, 3, 1)).astype(jnp.bfloat16)
    x = conv_bn_relu(x, prep["wc1"], prep["bc1"])
    x = conv_bn_relu(x, prep["wc2"], prep["bc2"])
    x = conv_bn_relu(x, prep["wc3"], prep["bc3"])
    n, ho, wo, c = x.shape
    x_flat = x.reshape(n, ho * wo * c)                      # NHWC flatten (bf16)
    return linear_l2norm(x_flat, prep["wl"], prep["bl"])


# ----------------------------------------------------------------------------
# Pure-JAX (f32) reference mirroring the PyTorch module (eval-mode BN)
# ----------------------------------------------------------------------------
def reference_forward(x_nchw, params, eps=1e-5):
    def layer(x, w, b, g, be, m, v):
        y = jax.lax.conv_general_dilated(
            x, w, window_strides=(2, 2), padding="VALID",
            dimension_numbers=("NCHW", "OIHW", "NCHW"))
        y = y + b.reshape(1, -1, 1, 1)
        y = (y - m.reshape(1, -1, 1, 1)) / jnp.sqrt(v.reshape(1, -1, 1, 1) + eps)
        y = y * g.reshape(1, -1, 1, 1) + be.reshape(1, -1, 1, 1)
        return jnp.maximum(y, 0.0)

    x = x_nchw.astype(jnp.float32)
    x = layer(x, params["w1"], params["b1"], params["g1"], params["be1"],
              params["m1"], params["v1"])
    x = layer(x, params["w2"], params["b2"], params["g2"], params["be2"],
              params["m2"], params["v2"])
    x = layer(x, params["w3"], params["b3"], params["g3"], params["be3"],
              params["m3"], params["v3"])
    xf = x.reshape(x.shape[0], -1)                          # NCHW flatten
    y = xf @ params["wl"].T + params["bl"]
    return y / jnp.linalg.norm(y, axis=1, keepdims=True)


# ----------------------------------------------------------------------------
# Deterministic parameter construction
# ----------------------------------------------------------------------------
def make_params(key, h, w, feature_size):
    convw = _conv_out_size(_conv_out_size(_conv_out_size(w)))
    convh = _conv_out_size(_conv_out_size(_conv_out_size(h)))
    lin_in = convw * convh * 32

    ks = jax.random.split(key, 20)

    def nrm(k, shape, s=0.05):
        return jax.random.normal(k, shape, jnp.float32) * s

    params = {
        "w1": nrm(ks[0], (16, 3, 5, 5)),   "b1": nrm(ks[1], (16,)),
        "g1": 1.0 + nrm(ks[2], (16,)),     "be1": nrm(ks[3], (16,)),
        "m1": nrm(ks[4], (16,)),           "v1": jnp.abs(1.0 + nrm(ks[5], (16,))),
        "w2": nrm(ks[6], (32, 16, 5, 5)),  "b2": nrm(ks[7], (32,)),
        "g2": 1.0 + nrm(ks[8], (32,)),     "be2": nrm(ks[9], (32,)),
        "m2": nrm(ks[10], (32,)),          "v2": jnp.abs(1.0 + nrm(ks[11], (32,))),
        "w3": nrm(ks[12], (32, 32, 5, 5)), "b3": nrm(ks[13], (32,)),
        "g3": 1.0 + nrm(ks[14], (32,)),    "be3": nrm(ks[15], (32,)),
        "m3": nrm(ks[16], (32,)),          "v3": jnp.abs(1.0 + nrm(ks[17], (32,))),
        "wl": nrm(ks[18], (feature_size, lin_in)),
        "bl": nrm(ks[19], (feature_size,)),
    }
    return params


# ----------------------------------------------------------------------------
if __name__ == "__main__":
    H, W = 40, 40          # conv sizes 18 -> 7 -> 2, linear_input = 2*2*32 = 128
    BATCH = 2
    FEATURE = 32

    key = jax.random.PRNGKey(0)
    k_x, k_p = jax.random.split(key)
    x = jax.random.normal(k_x, (BATCH, 3, H, W), jnp.float32)
    params = make_params(k_p, H, W, FEATURE)

    prep = prepare_params(params, H, W)                 # one-time, outside jit
    out = encoder_forward(x, prep)
    out = jax.block_until_ready(out)

    assert out.shape == (BATCH, FEATURE), out.shape
    assert bool(jnp.all(jnp.isfinite(out)))

    # rows should be unit-norm after L2Norm (normalization done in f32)
    norms = jnp.linalg.norm(out, axis=1)
    assert bool(jnp.all(jnp.abs(norms - 1.0) < 1e-3)), norms

    # direction check against the f32 reference (bf16 matmuls -> loose bound)
    ref = reference_forward(x, params)
    cos = jnp.sum(out * ref, axis=1)                    # both rows unit-norm
    assert bool(jnp.all(cos > 0.99)), cos

    print("KERNEL_OK")
</pallas_src>

<mosaic_0001>
module attributes {stable_mosaic.version = 11 : i64} {
  func.func @conv_bn_relu_kernel(%arg0: i32, %arg1: memref<336x75xbf16, #tpu.memory_space<vmem>>, %arg2: memref<75x16xbf16, #tpu.memory_space<vmem>>, %arg3: memref<1x16xf32, #tpu.memory_space<vmem>>, %arg4: memref<336x16xbf16, #tpu.memory_space<vmem>>) attributes {dimension_semantics = [#tpu.dimension_semantics<parallel>], iteration_bounds = array<i64: 2>, scalar_prefetch = 0 : i64, scratch_operands = 0 : i64, tpu.core_type = #tpu.core_type<tc>, window_params = [{transform_indices = @transform_0, window_bounds = array<i64: 336, 75>}, {pipeline_mode = #tpu.pipeline_mode<synchronous>, transform_indices = @transform_1, window_bounds = array<i64: 75, 16>}, {pipeline_mode = #tpu.pipeline_mode<synchronous>, transform_indices = @transform_2, window_bounds = array<i64: 1, 16>}, {transform_indices = @transform_3, window_bounds = array<i64: 336, 16>}]} {
    %c0 = arith.constant 0 : index
    %c0_0 = arith.constant 0 : index
    %0 = vector.load %arg1[%c0, %c0_0] : memref<336x75xbf16, #tpu.memory_space<vmem>>, vector<336x75xbf16>
    %c0_1 = arith.constant 0 : index
    %c0_2 = arith.constant 0 : index
    %1 = vector.load %arg2[%c0_1, %c0_2] : memref<75x16xbf16, #tpu.memory_space<vmem>>, vector<75x16xbf16>
    %cst = arith.constant dense<0.000000e+00> : vector<336x16xf32>
    %2 = tpu.matmul %0, %1, %cst {dimension_numbers = #tpu.dot_dimension_numbers<[1], [0], [0], [1], [0, 0, 1, 1], [], []>} : vector<336x75xbf16>, vector<75x16xbf16>, vector<336x16xf32> -> vector<336x16xf32>
    %c0_3 = arith.constant 0 : index
    %c0_4 = arith.constant 0 : index
    %3 = vector.load %arg3[%c0_3, %c0_4] : memref<1x16xf32, #tpu.memory_space<vmem>>, vector<1x16xf32>
    %4 = vector.broadcast %3 : vector<1x16xf32> to vector<336x16xf32>
    %5 = arith.addf %2, %4 : vector<336x16xf32>
    %cst_5 = arith.constant 0.000000e+00 : f32
    %6 = vector.broadcast %cst_5 : f32 to vector<336x16xf32>
    %7 = arith.maximumf %5, %6 : vector<336x16xf32>
    %8 = arith.truncf %7 : vector<336x16xf32> to vector<336x16xbf16>
    %c0_6 = arith.constant 0 : index
    %c0_7 = arith.constant 0 : index
    %9 = vector.load %arg4[%c0_6, %c0_7] : memref<336x16xbf16, #tpu.memory_space<vmem>>, vector<336x16xbf16>
    tpu.vector_store %arg4[%c0_6, %c0_7], %8 {strides = array<i32>} : memref<336x16xbf16, #tpu.memory_space<vmem>>, vector<336x16xbf16>,
    return
  }
  func.func @transform_0(%arg0: i32) -> (i32, i32) {
    %c0_i32 = arith.constant 0 : i32
    %c0_i32_0 = arith.constant 0 : i32
    return %arg0, %c0_i32 : i32, i32
  }
  func.func @transform_1(%arg0: i32) -> (i32, i32) {
    %c0_i32 = arith.constant 0 : i32
    %c0_i32_0 = arith.constant 0 : i32
    %c0_i32_1 = arith.constant 0 : i32
    return %c0_i32, %c0_i32_0 : i32, i32
  }
  func.func @transform_2(%arg0: i32) -> (i32, i32) {
    %c0_i32 = arith.constant 0 : i32
    %c0_i32_0 = arith.constant 0 : i32
    %c0_i32_1 = arith.constant 0 : i32
    return %c0_i32, %c0_i32_0 : i32, i32
  }
  func.func @transform_3(%arg0: i32) -> (i32, i32) {
    %c0_i32 = arith.constant 0 : i32
    %c0_i32_0 = arith.constant 0 : i32
    return %arg0, %c0_i32 : i32, i32
  }
}

module attributes {stable_mosaic.version = 11 : i64} {
  func.func @conv_bn_relu_kernel(%arg0: i32, %arg1: memref<98x400xbf16, #tpu.memory_space<vmem>>, %arg2: memref<400x32xbf16, #tpu.memory_space<vmem>>, %arg3: memref<1x32xf32, #tpu.memory_space<vmem>>, %arg4: memref<98x32xbf16, #tpu.memory_space<vmem>>) attributes {dimension_semantics = [#tpu.dimension_semantics<parallel>], iteration_bounds = array<i64: 1>, scalar_prefetch = 0 : i64, scratch_operands = 0 : i64, tpu.core_type = #tpu.core_type<tc>, window_params = [{transform_indices = @transform_0, window_bounds = array<i64: 98, 400>}, {pipeline_mode = #tpu.pipeline_mode<synchronous>, transform_indices = @transform_1, window_bounds = array<i64: 400, 32>}, {pipeline_mode = #tpu.pipeline_mode<synchronous>, transform_indices = @transform_2, window_bounds = array<i64: 1, 32>}, {transform_indices = @transform_3, window_bounds = array<i64: 98, 32>}]} {
    %c0 = arith.constant 0 : index
    %c0_0 = arith.constant 0 : index
    %0 = vector.load %arg1[%c0, %c0_0] : memref<98x400xbf16, #tpu.memory_space<vmem>>, vector<98x400xbf16>
    %c0_1 = arith.constant 0 : index
    %c0_2 = arith.constant 0 : index
    %1 = vector.load %arg2[%c0_1, %c0_2] : memref<400x32xbf16, #tpu.memory_space<vmem>>, vector<400x32xbf16>
    %cst = arith.constant dense<0.000000e+00> : vector<98x32xf32>
    %2 = tpu.matmul %0, %1, %cst {dimension_numbers = #tpu.dot_dimension_numbers<[1], [0], [0], [1], [0, 0, 1, 1], [], []>} : vector<98x400xbf16>, vector<400x32xbf16>, vector<98x32xf32> -> vector<98x32xf32>
    %c0_3 = arith.constant 0 : index
    %c0_4 = arith.constant 0 : index
    %3 = vector.load %arg3[%c0_3, %c0_4] : memref<1x32xf32, #tpu.memory_space<vmem>>, vector<1x32xf32>
    %4 = vector.broadcast %3 : vector<1x32xf32> to vector<98x32xf32>
    %5 = arith.addf %2, %4 : vector<98x32xf32>
    %cst_5 = arith.constant 0.000000e+00 : f32
    %6 = vector.broadcast %cst_5 : f32 to vector<98x32xf32>
    %7 = arith.maximumf %5, %6 : vector<98x32xf32>
    %8 = arith.truncf %7 : vector<98x32xf32> to vector<98x32xbf16>
    %c0_6 = arith.constant 0 : index
    %c0_7 = arith.constant 0 : index
    %9 = vector.load %arg4[%c0_6, %c0_7] : memref<98x32xbf16, #tpu.memory_space<vmem>>, vector<98x32xbf16>
    tpu.vector_store %arg4[%c0_6, %c0_7], %8 {strides = array<i32>} : memref<98x32xbf16, #tpu.memory_space<vmem>>, vector<98x32xbf16>,
    return
  }
  func.func @transform_0(%arg0: i32) -> (i32, i32) {
    %c0_i32 = arith.constant 0 : i32
    %c0_i32_0 = arith.constant 0 : i32
    return %arg0, %c0_i32 : i32, i32
  }
  func.func @transform_1(%arg0: i32) -> (i32, i32) {
    %c0_i32 = arith.constant 0 : i32
    %c0_i32_0 = arith.constant 0 : i32
    %c0_i32_1 = arith.constant 0 : i32
    return %c0_i32, %c0_i32_0 : i32, i32
  }
  func.func @transform_2(%arg0: i32) -> (i32, i32) {
    %c0_i32 = arith.constant 0 : i32
    %c0_i32_0 = arith.constant 0 : i32
    %c0_i32_1 = arith.constant 0 : i32
    return %c0_i32, %c0_i32_0 : i32, i32
  }
  func.func @transform_3(%arg0: i32) -> (i32, i32) {
    %c0_i32 = arith.constant 0 : i32
    %c0_i32_0 = arith.constant 0 : i32
    return %arg0, %c0_i32 : i32, i32
  }
}

module attributes {stable_mosaic.version = 11 : i64} {
  func.func @linear_l2norm_kernel(%arg0: i32, %arg1: memref<2x128xbf16, #tpu.memory_space<vmem>>, %arg2: memref<128x32xbf16, #tpu.memory_space<vmem>>, %arg3: memref<1x32xf32, #tpu.memory_space<vmem>>, %arg4: memref<2x32xf32, #tpu.memory_space<vmem>>) attributes {dimension_semantics = [#tpu.dimension_semantics<parallel>], iteration_bounds = array<i64: 1>, scalar_prefetch = 0 : i64, scratch_operands = 0 : i64, tpu.core_type = #tpu.core_type<tc>, window_params = [{transform_indices = @transform_0, window_bounds = array<i64: 2, 128>}, {pipeline_mode = #tpu.pipeline_mode<synchronous>, transform_indices = @transform_1, window_bounds = array<i64: 128, 32>}, {pipeline_mode = #tpu.pipeline_mode<synchronous>, transform_indices = @transform_2, window_bounds = array<i64: 1, 32>}, {transform_indices = @transform_3, window_bounds = array<i64: 2, 32>}]} {
    %c0 = arith.constant 0 : index
    %c0_0 = arith.constant 0 : index
    %0 = vector.load %arg1[%c0, %c0_0] : memref<2x128xbf16, #tpu.memory_space<vmem>>, vector<2x128xbf16>
    %c0_1 = arith.constant 0 : index
    %c0_2 = arith.constant 0 : index
    %1 = vector.load %arg2[%c0_1, %c0_2] : memref<128x32xbf16, #tpu.memory_space<vmem>>, vector<128x32xbf16>
    %cst = arith.constant dense<0.000000e+00> : vector<2x32xf32>
    %2 = tpu.matmul %0, %1, %cst {dimension_numbers = #tpu.dot_dimension_numbers<[1], [0], [0], [1], [0, 0, 1, 1], [], []>} : vector<2x128xbf16>, vector<128x32xbf16>, vector<2x32xf32> -> vector<2x32xf32>
    %c0_3 = arith.constant 0 : index
    %c0_4 = arith.constant 0 : index
    %3 = vector.load %arg3[%c0_3, %c0_4] : memref<1x32xf32, #tpu.memory_space<vmem>>, vector<1x32xf32>
    %4 = vector.broadcast %3 : vector<1x32xf32> to vector<2x32xf32>
    %5 = arith.addf %2, %4 : vector<2x32xf32>
    %6 = arith.mulf %5, %5 : vector<2x32xf32>
    %cst_5 = arith.constant dense<0.000000e+00> : vector<2xf32>
    %7 = vector.multi_reduction <add>, %6, %cst_5 [1] : vector<2x32xf32> to vector<2xf32>
    %8 = vector.shape_cast %7 : vector<2xf32> to vector<2x1xf32>
    %cst_6 = arith.constant 9.99999996E-13 : f32
    %9 = vector.broadcast %cst_6 : f32 to vector<2x1xf32>
    %10 = arith.addf %8, %9 : vector<2x1xf32>
    %11 = math.rsqrt %10 : vector<2x1xf32>
    %12 = vector.broadcast %11 : vector<2x1xf32> to vector<2x32xf32>
    %13 = arith.mulf %5, %12 : vector<2x32xf32>
    %c0_7 = arith.constant 0 : index
    %c0_8 = arith.constant 0 : index
    %14 = vector.load %arg4[%c0_7, %c0_8] : memref<2x32xf32, #tpu.memory_space<vmem>>, vector<2x32xf32>
    tpu.vector_store %arg4[%c0_7, %c0_8], %13 {strides = array<i32>} : memref<2x32xf32, #tpu.memory_space<vmem>>, vector<2x32xf32>,
    return
  }
  func.func @transform_0(%arg0: i32) -> (i32, i32) {
    %c0_i32 = arith.constant 0 : i32
    %c0_i32_0 = arith.constant 0 : i32
    return %arg0, %c0_i32 : i32, i32
  }
  func.func @transform_1(%arg0: i32) -> (i32, i32) {
    %c0_i32 = arith.constant 0 : i32
    %c0_i32_0 = arith.constant 0 : i32
    %c0_i32_1 = arith.constant 0 : i32
    return %c0_i32, %c0_i32_0 : i32, i32
  }
  func.func @transform_2(%arg0: i32) -> (i32, i32) {
    %c0_i32 = arith.constant 0 : i32
    %c0_i32_0 = arith.constant 0 : i32
    %c0_i32_1 = arith.constant 0 : i32
    return %c0_i32, %c0_i32_0 : i32, i32
  }
  func.func @transform_3(%arg0: i32) -> (i32, i32) {
    %c0_i32 = arith.constant 0 : i32
    %c0_i32_0 = arith.constant 0 : i32
    return %arg0, %c0_i32 : i32, i32
  }
}

module attributes {stable_mosaic.version = 11 : i64} {
  func.func @conv_bn_relu_kernel(%arg0: i32, %arg1: memref<8x800xbf16, #tpu.memory_space<vmem>>, %arg2: memref<800x32xbf16, #tpu.memory_space<vmem>>, %arg3: memref<1x32xf32, #tpu.memory_space<vmem>>, %arg4: memref<8x32xbf16, #tpu.memory_space<vmem>>) attributes {dimension_semantics = [#tpu.dimension_semantics<parallel>], iteration_bounds = array<i64: 1>, scalar_prefetch = 0 : i64, scratch_operands = 0 : i64, tpu.core_type = #tpu.core_type<tc>, window_params = [{transform_indices = @transform_0, window_bounds = array<i64: 8, 800>}, {pipeline_mode = #tpu.pipeline_mode<synchronous>, transform_indices = @transform_1, window_bounds = array<i64: 800, 32>}, {pipeline_mode = #tpu.pipeline_mode<synchronous>, transform_indices = @transform_2, window_bounds = array<i64: 1, 32>}, {transform_indices = @transform_3, window_bounds = array<i64: 8, 32>}]} {
    %c0 = arith.constant 0 : index
    %c0_0 = arith.constant 0 : index
    %0 = vector.load %arg1[%c0, %c0_0] : memref<8x800xbf16, #tpu.memory_space<vmem>>, vector<8x800xbf16>
    %c0_1 = arith.constant 0 : index
    %c0_2 = arith.constant 0 : index
    %1 = vector.load %arg2[%c0_1, %c0_2] : memref<800x32xbf16, #tpu.memory_space<vmem>>, vector<800x32xbf16>
    %cst = arith.constant dense<0.000000e+00> : vector<8x32xf32>
    %2 = tpu.matmul %0, %1, %cst {dimension_numbers = #tpu.dot_dimension_numbers<[1], [0], [0], [1], [0, 0, 1, 1], [], []>} : vector<8x800xbf16>, vector<800x32xbf16>, vector<8x32xf32> -> vector<8x32xf32>
    %c0_3 = arith.constant 0 : index
    %c0_4 = arith.constant 0 : index
    %3 = vector.load %arg3[%c0_3, %c0_4] : memref<1x32xf32, #tpu.memory_space<vmem>>, vector<1x32xf32>
    %4 = vector.broadcast %3 : vector<1x32xf32> to vector<8x32xf32>
    %5 = arith.addf %2, %4 : vector<8x32xf32>
    %cst_5 = arith.constant 0.000000e+00 : f32
    %6 = vector.broadcast %cst_5 : f32 to vector<8x32xf32>
    %7 = arith.maximumf %5, %6 : vector<8x32xf32>
    %8 = arith.truncf %7 : vector<8x32xf32> to vector<8x32xbf16>
    %c0_6 = arith.constant 0 : index
    %c0_7 = arith.constant 0 : index
    %9 = vector.load %arg4[%c0_6, %c0_7] : memref<8x32xbf16, #tpu.memory_space<vmem>>, vector<8x32xbf16>
    tpu.vector_store %arg4[%c0_6, %c0_7], %8 {strides = array<i32>} : memref<8x32xbf16, #tpu.memory_space<vmem>>, vector<8x32xbf16>,
    return
  }
  func.func @transform_0(%arg0: i32) -> (i32, i32) {
    %c0_i32 = arith.constant 0 : i32
    %c0_i32_0 = arith.constant 0 : i32
    return %arg0, %c0_i32 : i32, i32
  }
  func.func @transform_1(%arg0: i32) -> (i32, i32) {
    %c0_i32 = arith.constant 0 : i32
    %c0_i32_0 = arith.constant 0 : i32
    %c0_i32_1 = arith.constant 0 : i32
    return %c0_i32, %c0_i32_0 : i32, i32
  }
  func.func @transform_2(%arg0: i32) -> (i32, i32) {
    %c0_i32 = arith.constant 0 : i32
    %c0_i32_0 = arith.constant 0 : i32
    %c0_i32_1 = arith.constant 0 : i32
    return %c0_i32, %c0_i32_0 : i32, i32
  }
  func.func @transform_3(%arg0: i32) -> (i32, i32) {
    %c0_i32 = arith.constant 0 : i32
    %c0_i32_0 = arith.constant 0 : i32
    return %arg0, %c0_i32 : i32, i32
  }
}

</mosaic_0001>

<bundles_post_ra>
// kernel: encoder_forward.4
= control target key start
LH: loop header
LB: loop body
LE: loop exit
PB: predicated region body
PF: predicated region fallthrough
CT: control target
= control target key end

     0   :  { %s1288_s12 = smov 0   ;;  %s1556_s0 = inlined_call_operand.vmem [shape: bf16[672,75], index: 0, kind: input, shape index: {}]   ;;  %s1557_s1 = inlined_call_operand.vmem [shape: bf16[75,16], index: 1, kind: input, shape index: {}]   ;;  %s1558_s2 = inlined_call_operand.vmem [shape: f32[1,16], index: 2, kind: input, shape index: {}]   ;;  %s1559_s3 = inlined_call_operand.vmem [shape: bf16[672,16], index: 3, kind: output, shape index: {}]  }
   0x1 LB: > { %s949_s13 = sadd.s32 4294967295, %s1263_s12   ;;  %p953_p0 = scmp.ge.s32.totalorder %s1263_s12, 1  ;;  %s1263_s12 = sphi %s1288_s12, %s13_s12  }
   0x2   : > { %p138_p1 = scmp.lt.s32.totalorder %s1263_s12, 3 }
   0x4   : > { %p139_p2 = pnand %p953_p0, %p138_p1 }
   0x5   : > { %v1231_v0 = vld [vmem:[%s1557_s1] sm:$0xff] (!%p139_p2)   ;;  %v1265_v1 = vmov (!%p139_p2), 0.0   ;;  %v1232_v2 = vld [vmem:[%s1557_s1 + $0x8] sm:$0xff] (!%p139_p2)   ;;  %vm432_vm0 = vcmask (!%p139_p2), 1044480   ;;  %s162_s18 = smul.u32 (!%p139_p2), 42, %s949_s13  ;;  %v1233_v3 = vld [vmem:[%s1557_s1 + $0x10] sm:$0xff] (!%p139_p2)  }
   0x6   : > { %142 = sbr.rel (%p139_p2) target bundleno = 327 (0x147), region = 32  ;;  %1116 = vmatprep.subr.bf16.mxu0 (!%p139_p2), %v1265_v1  ;;  %1210 = vmatprep.subr.bf16.mxu1 (!%p139_p2), %v1265_v1  ;;  %vm433_vm1 = vcmask (!%p139_p2), 1045504   ;;  %v1266_v4 = vmov (!%p139_p2), 65535   ;;  %vm1267_vm2 = vmmov (!%p139_p2), 0   ;;  %v1234_v6 = vld [vmem:[%s1557_s1 + $0x18] sm:$0xff] (!%p139_p2)   ;;  %vm368_vm3 = vcmask (!%p139_p2), 613376  }
   0x7   : > { %1117 = vmatpush3.bf16.msra.mxu0 (!%p139_p2), %v1231_v0  ;;  %1215 = vmatpush3.bf16.msra.mxu1 (!%p139_p2), %v1231_v0  ;;  %p163_p3 = scmp.lt.s32.totalorder (!%p139_p2), %s162_s18, 83  ;;  %v434_v5 = vsel (!%p139_p2), %vm432_vm0, 4294967295, %v1266_v4  ;;  %v1235_v7 = vld [vmem:[%s1557_s1 + $0x20] sm:$0x3f] (!%p139_p2)   ;;  %vm850_vm4 = vcmask (!%p139_p2), 125952  }
   0x8   : > { %1118 = vmatprep.subr.bf16.mxu0 (!%p139_p2), %v1265_v1  ;;  %1211 = vmatprep.subr.bf16.mxu1 (!%p139_p2), %v1265_v1  ;;  %v435_v8 = vsel (!%p139_p2), %vm433_vm1, %v434_v5, 0  ;;  %v1418_v31 = vld [vmem:[%s1558_s2] ss:$0 sm:$0xff] (!%p139_p2) }
   0x9   : > { %1126 = vmatprep.mubr.msk.bf16.mxu0 (!%p139_p2), %vm1267_vm2, %v1265_v1  ;;  %1170 = vmatprep.mubr.msk.bf16.mxu1 (!%p139_p2), %vm1267_vm2, %v1265_v1  ;;  %v437_v9 = vand.u32 (!%p139_p2), %v1235_v7, %v435_v8 }
   0xb   : > { %1119 = vmatpush3.bf16.msra.mxu0 (!%p139_p2), %v1232_v2  ;;  %1216 = vmatpush3.bf16.msra.mxu1 (!%p139_p2), %v1232_v2 }
   0xc   : > { %1120 = vmatprep.subr.bf16.mxu0 (!%p139_p2), %v1265_v1  ;;  %1212 = vmatprep.subr.bf16.mxu1 (!%p139_p2), %v1265_v1 }
   0xd   : > { %s1561_s18 = smov (!%p163_p3, %s162_s18), 83 }
   0xe   : > { %s954_s25 = sshll.u32 %s1561_s18, 2 }
   0xf   : > { %1121 = vmatpush3.bf16.msra.mxu0 %v1233_v3  ;;  %1217 = vmatpush3.bf16.msra.mxu1 %v1233_v3  ;;  %s1331_s28 = scalar_lea.vmem %s1556_s0, %s954_s25  ;;  %s1429_s6 = scalar_lea.vmem %s1559_s3, %s954_s25 }
  0x10   : > { %1122 = vmatprep.subr.bf16.mxu0 %v1265_v1  ;;  %1213 = vmatprep.subr.bf16.mxu1 %v1265_v1  ;;  %v1236_v10 = vld [vmem:[%s1331_s28] sm:$0xff]   ;;  %v1237_v11 = vld [vmem:[%s1331_s28 + $0x58] sm:$0xff]   ;;  %v1238_v12 = vld [vmem:[%s1331_s28 + $0x8] sm:$0xff]  }
  0x11   : > { %v1239_v13 = vld [vmem:[%s1331_s28 + $0x60] sm:$0xff]   ;;  %v1240_v14 = vld [vmem:[%s1331_s28 + $0x10] sm:$0xff]   ;;  %v1241_v15 = vld [vmem:[%s1331_s28 + $0x68] sm:$0xff]  }
  0x12   : > { %v1242_v16 = vld [vmem:[%s1331_s28 + $0x18] sm:$0xff]   ;;  %v1243_v17 = vld [vmem:[%s1331_s28 + $0x70] sm:$0xff]   ;;  %v1244_v18 = vld [vmem:[%s1331_s28 + $0x20] sm:$0xff]  }
  0x13   : > { %1123 = vmatpush3.bf16.msra.mxu0 %v1234_v6  ;;  %1218 = vmatpush3.bf16.msra.mxu1 %v1234_v6  ;;  %v1245_v19 = vld [vmem:[%s1331_s28 + $0x78] sm:$0xff]   ;;  %v1246_v20 = vld [vmem:[%s1331_s28 + $0x28] sm:$0xff]   ;;  %v1247_v21 = vld [vmem:[%s1331_s28 + $0x80] sm:$0xff]  }
  0x14   : > { %1124 = vmatprep.subr.bf16.mxu0 %v1265_v1  ;;  %1214 = vmatprep.subr.bf16.mxu1 %v1265_v1  ;;  %v1248_v22 = vld [vmem:[%s1331_s28 + $0x30] sm:$0xff]   ;;  %v1249_v23 = vld [vmem:[%s1331_s28 + $0x88] sm:$0xff]   ;;  %v1250_v24 = vld [vmem:[%s1331_s28 + $0x38] sm:$0xff]  }
  0x15   : > { %v1251_v25 = vld [vmem:[%s1331_s28 + $0x90] sm:$0xff]   ;;  %v1252_v26 = vld [vmem:[%s1331_s28 + $0x40] sm:$0xff]   ;;  %v1253_v27 = vld [vmem:[%s1331_s28 + $0x98] sm:$0xff]  }
  0x16   : > { %v1254_v28 = vld [vmem:[%s1331_s28 + $0x48] sm:$0xff]   ;;  %v1255_v29 = vld [vmem:[%s1331_s28 + $0xa0] sm:$0xff]   ;;  %v1256_v30 = vld [vmem:[%s1331_s28 + $0x50] sm:$0xff]  }
  0x17   : > { %1125 = vmatpush3.bf16.msra.mxu0 %v437_v9  ;;  %1219 = vmatpush3.bf16.msra.mxu1 %v437_v9 }
  0x1a   : > { %1127 = vmatmul.mubr.msk.bf16.vlgmr.msra.gmra.mrb[0].mxu0 %vm368_vm3, %v1236_v10  ;;  %1171 = vmatmul.mubr.msk.bf16.vlgmr.msra.gmra.mrb[0].mxu1 %vm368_vm3, %v1237_v11 }
  0x1b   : > { %1130 = vmatprep.mubr.msk.bf16.mxu0 %vm1267_vm2, %v1265_v1  ;;  %1174 = vmatprep.mubr.msk.bf16.mxu1 %vm1267_vm2, %v1265_v1 }
  0x22   : > { %1131 = vmatmul.mubr.msk.bf16.gmra.mrb[4].mxu0 %vm368_vm3, %v1238_v12  ;;  %1175 = vmatmul.mubr.msk.bf16.gmra.mrb[4].mxu1 %vm368_vm3, %v1239_v13 }
  0x23   : > { %1134 = vmatprep.mubr.msk.bf16.mxu0 %vm1267_vm2, %v1265_v1  ;;  %1178 = vmatprep.mubr.msk.bf16.mxu1 %vm1267_vm2, %v1265_v1 }
  0x2a   : > { %1135 = vmatmul.mubr.msk.bf16.gmra.mrb[8].mxu0 %vm368_vm3, %v1240_v14  ;;  %1179 = vmatmul.mubr.msk.bf16.gmra.mrb[8].mxu1 %vm368_vm3, %v1241_v15 }
  0x2b   : > { %1138 = vmatprep.mubr.msk.bf16.mxu0 %vm1267_vm2, %v1265_v1  ;;  %1182 = vmatprep.mubr.msk.bf16.mxu1 %vm1267_vm2, %v1265_v1 }
  0x32   : > { %1139 = vmatmul.mubr.msk.bf16.gmra.mrb[12].mxu0 %vm368_vm3, %v1242_v16  ;;  %1183 = vmatmul.mubr.msk.bf16.gmra.mrb[12].mxu1 %vm368_vm3, %v1243_v17 }
  0x33   : > { %1142 = vmatprep.mubr.msk.bf16.mxu0 %vm1267_vm2, %v1265_v1  ;;  %1186 = vmatprep.mubr.msk.bf16.mxu1 %vm1267_vm2, %v1265_v1 }
  0x3a   : > { %1143 = vmatmul.mubr.msk.bf16.gmra.mrb[16].mxu0 %vm368_vm3, %v1244_v18  ;;  %1187 = vmatmul.mubr.msk.bf16.gmra.mrb[16].mxu1 %vm368_vm3, %v1245_v19 }
  0x3b   : > { %1146 = vmatprep.mubr.msk.bf16.mxu0 %vm1267_vm2, %v1265_v1  ;;  %1190 = vmatprep.mubr.msk.bf16.mxu1 %vm1267_vm2, %v1265_v1 }
  0x42   : > { %1147 = vmatmul.mubr.msk.bf16.gmra.mrb[20].mxu0 %vm368_vm3, %v1246_v20  ;;  %1191 = vmatmul.mubr.msk.bf16.gmra.mrb[20].mxu1 %vm368_vm3, %v1247_v21 }
  0x43   : > { %1150 = vmatprep.mubr.msk.bf16.mxu0 %vm1267_vm2, %v1265_v1  ;;  %1194 = vmatprep.mubr.msk.bf16.mxu1 %vm1267_vm2, %v1265_v1 }
  0x4a   : > { %1151 = vmatmul.mubr.msk.bf16.gmra.mrb[24].mxu0 %vm368_vm3, %v1248_v22  ;;  %1195 = vmatmul.mubr.msk.bf16.gmra.mrb[24].mxu1 %vm368_vm3, %v1249_v23 }
  0x4b   : > { %1154 = vmatprep.mubr.msk.bf16.mxu0 %vm1267_vm2, %v1265_v1  ;;  %1198 = vmatprep.mubr.msk.bf16.mxu1 %vm1267_vm2, %v1265_v1 }
  0x52   : > { %1155 = vmatmul.mubr.msk.bf16.gmra.mrb[28].mxu0 %vm368_vm3, %v1250_v24  ;;  %1199 = vmatmul.mubr.msk.bf16.gmra.mrb[28].mxu1 %vm368_vm3, %v1251_v25 }
  0x53   : > { %1158 = vmatprep.mubr.msk.bf16.mxu0 %vm1267_vm2, %v1265_v1  ;;  %1202 = vmatprep.mubr.msk.bf16.mxu1 %vm1267_vm2, %v1265_v1 }
  0x5a   : > { %1159 = vmatmul.mubr.msk.bf16.gmra.mrb[32].mxu0 %vm368_vm3, %v1252_v26  ;;  %1203 = vmatmul.mubr.msk.bf16.gmra.mrb[32].mxu1 %vm368_vm3, %v1253_v27 }
  0x5b   : > { %1162 = vmatprep.mubr.msk.bf16.mxu0 %vm1267_vm2, %v1265_v1  ;;  %1206 = vmatprep.mubr.msk.bf16.mxu1 %vm1267_vm2, %v1265_v1 }
  0x62   : > { %1163 = vmatmul.mubr.msk.bf16.gmra.mrb[36].mxu0 %vm368_vm3, %v1254_v28  ;;  %1207 = vmatmul.mubr.msk.bf16.gmra.mrb[36].mxu1 %vm368_vm3, %v1255_v29 }
  0x63   : > { %1166 = vmatprep.mubr.msk.bf16.mxu0 %vm1267_vm2, %v1265_v1 }
  0x6a   : > { %1167 = vmatmul.mubr.msk.bf16.gmra.mrb[40].mxu0 %vm368_vm3, %v1256_v30 }
  0xed   : > { %v473_v32 = vpop.f32.mrb[0].mxu0  ;;  %v561_v33 = vpop.f32.mrb[0].mxu1 }
  0xee   : > { %v474_v34 = vadd.f32 %v1418_v31, %v473_v32  ;;  %v1128_v35 = vpop.f32.mrb[1].mxu0  ;;  %v562_v36 = vadd.f32 %v1418_v31, %v561_v33  ;;  %v1172_v37 = vpop.f32.mrb[1].mxu1 }
  0xef   : > { %v476_v38 = vpop.f32.mrb[2].mxu0  ;;  %v564_v39 = vpop.f32.mrb[2].mxu1 }
  0xf0   : > { %v640_v40 = vmax.f32 %v474_v34, 0.0  ;;  %v477_v41 = vadd.f32 %v1418_v31, %v476_v38  ;;  %v1129_v42 = vpop.f32.mrb[3].mxu0  ;;  %v662_v43 = vmax.f32 %v562_v36, 0.0  ;;  %v565_v44 = vadd.f32 %v1418_v31, %v564_v39  ;;  %v1173_v45 = vpop.f32.mrb[3].mxu1 }
  0xf2   : > { %v1048_v46 = vpack.c.bf16 %v640_v40, %v640_v40  ;;  %v641_v47 = vmax.f32 %v477_v41, 0.0  ;;  %v1070_v48 = vpack.c.bf16 %v662_v43, %v662_v43  ;;  %v663_v49 = vmax.f32 %v565_v44, 0.0 }
  0xf4   : > { %851 = vst.msk [vmem:[%s1429_s6] sm:$0xf] %vm850_vm4, %v1048_v46  ;;  %v1049_v50 = vpack.c.bf16 %v641_v47, %v641_v47  ;;  %873 = vst.msk [vmem:[%s1429_s6 + $0x58] sm:$0xf] %vm850_vm4, %v1070_v48  ;;  %v1071_v51 = vpack.c.bf16 %v663_v49, %v663_v49 }
  0xf5   : > { %v481_v52 = vpop.f32.mrb[4].mxu0  ;;  %v569_v53 = vpop.f32.mrb[4].mxu1 }
  0xf6   : > { %852 = vst.msk [vmem:[%s1429_s6 + $0x4] sm:$0xf] %vm850_vm4, %v1049_v50  ;;  %874 = vst.msk [vmem:[%s1429_s6 + $0x5c] sm:$0xf] %vm850_vm4, %v1071_v51  ;;  %v482_v54 = vadd.f32 %v1418_v31, %v481_v52  ;;  %v1132_v55 = vpop.f32.mrb[5].mxu0  ;;  %v570_v56 = vadd.f32 %v1418_v31, %v569_v53  ;;  %v1176_v57 = vpop.f32.mrb[5].mxu1 }
  0xf7   : > { %v484_v58 = vpop.f32.mrb[6].mxu0  ;;  %v572_v59 = vpop.f32.mrb[6].mxu1 }
  0xf8   : > { %v642_v60 = vmax.f32 %v482_v54, 0.0  ;;  %v485_v61 = vadd.f32 %v1418_v31, %v484_v58  ;;  %v1133_v62 = vpop.f32.mrb[7].mxu0  ;;  %v664_v63 = vmax.f32 %v570_v56, 0.0  ;;  %v573_v0 = vadd.f32 %v1418_v31, %v572_v59  ;;  %v1177_v1 = vpop.f32.mrb[7].mxu1 }
  0xfa   : > { %v1050_v2 = vpack.c.bf16 %v642_v60, %v642_v60  ;;  %v643_v3 = vmax.f32 %v485_v61, 0.0  ;;  %v1072_v4 = vpack.c.bf16 %v664_v63, %v664_v63  ;;  %v665_v5 = vmax.f32 %v573_v0, 0.0 }
  0xfc   : > { %853 = vst.msk [vmem:[%s1429_s6 + $0x8] sm:$0xf] %vm850_vm4, %v1050_v2  ;;  %v1051_v6 = vpack.c.bf16 %v643_v3, %v643_v3  ;;  %875 = vst.msk [vmem:[%s1429_s6 + $0x60] sm:$0xf] %vm850_vm4, %v1072_v4  ;;  %v1073_v7 = vpack.c.bf16 %v665_v5, %v665_v5 }
  0xfd   : > { %v489_v8 = vpop.f32.mrb[8].mxu0  ;;  %v577_v9 = vpop.f32.mrb[8].mxu1 }
  0xfe   : > { %854 = vst.msk [vmem:[%s1429_s6 + $0xc] sm:$0xf] %vm850_vm4, %v1051_v6  ;;  %876 = vst.msk [vmem:[%s1429_s6 + $0x64] sm:$0xf] %vm850_vm4, %v1073_v7  ;;  %v490_v10 = vadd.f32 %v1418_v31, %v489_v8  ;;  %v1136_v11 = vpop.f32.mrb[9].mxu0  ;;  %v578_v12 = vadd.f32 %v1418_v31, %v577_v9  ;;  %v1180_v13 = vpop.f32.mrb[9].mxu1 }
  0xff   : > { %v492_v14 = vpop.f32.mrb[10].mxu0  ;;  %v580_v15 = vpop.f32.mrb[10].mxu1 }
 0x100   : > { %v644_v16 = vmax.f32 %v490_v10, 0.0  ;;  %v493_v17 = vadd.f32 %v1418_v31, %v492_v14  ;;  %v1137_v18 = vpop.f32.mrb[11].mxu0  ;;  %v666_v19 = vmax.f32 %v578_v12, 0.0  ;;  %v581_v20 = vadd.f32 %v1418_v31, %v580_v15  ;;  %v1181_v21 = vpop.f32.mrb[11].mxu1 }
 0x102   : > { %v1052_v22 = vpack.c.bf16 %v644_v16, %v644_v16  ;;  %v645_v23 = vmax.f32 %v493_v17, 0.0  ;;  %v1074_v24 = vpack.c.bf16 %v666_v19, %v666_v19  ;;  %v667_v25 = vmax.f32 %v581_v20, 0.0 }
 0x104   : > { %855 = vst.msk [vmem:[%s1429_s6 + $0x10] sm:$0xf] %vm850_vm4, %v1052_v22  ;;  %v1053_v26 = vpack.c.bf16 %v645_v23, %v645_v23  ;;  %877 = vst.msk [vmem:[%s1429_s6 + $0x68] sm:$0xf] %vm850_vm4, %v1074_v24  ;;  %v1075_v27 = vpack.c.bf16 %v667_v25, %v667_v25 }
 0x105   : > { %v497_v28 = vpop.f32.mrb[12].mxu0  ;;  %v585_v29 = vpop.f32.mrb[12].mxu1 }
 0x106   : > { %856 = vst.msk [vmem:[%s1429_s6 + $0x14] sm:$0xf] %vm850_vm4, %v1053_v26  ;;  %878 = vst.msk [vmem:[%s1429_s6 + $0x6c] sm:$0xf] %vm850_vm4, %v1075_v27  ;;  %v498_v30 = vadd.f32 %v1418_v31, %v497_v28  ;;  %v1140_v32 = vpop.f32.mrb[13].mxu0  ;;  %v586_v33 = vadd.f32 %v1418_v31, %v585_v29  ;;  %v1184_v34 = vpop.f32.mrb[13].mxu1 }
 0x107   : > { %v500_v35 = vpop.f32.mrb[14].mxu0  ;;  %v588_v36 = vpop.f32.mrb[14].mxu1 }
 0x108   : > { %v646_v37 = vmax.f32 %v498_v30, 0.0  ;;  %v501_v38 = vadd.f32 %v1418_v31, %v500_v35  ;;  %v1141_v39 = vpop.f32.mrb[15].mxu0  ;;  %v668_v40 = vmax.f32 %v586_v33, 0.0  ;;  %v589_v41 = vadd.f32 %v1418_v31, %v588_v36  ;;  %v1185_v42 = vpop.f32.mrb[15].mxu1 }
 0x10a   : > { %v1054_v43 = vpack.c.bf16 %v646_v37, %v646_v37  ;;  %v647_v44 = vmax.f32 %v501_v38, 0.0  ;;  %v1076_v45 = vpack.c.bf16 %v668_v40, %v668_v40  ;;  %v669_v46 = vmax.f32 %v589_v41, 0.0 }
 0x10c   : > { %857 = vst.msk [vmem:[%s1429_s6 + $0x18] sm:$0xf] %vm850_vm4, %v1054_v43  ;;  %v1055_v47 = vpack.c.bf16 %v647_v44, %v647_v44  ;;  %879 = vst.msk [vmem:[%s1429_s6 + $0x70] sm:$0xf] %vm850_vm4, %v1076_v45  ;;  %v1077_v48 = vpack.c.bf16 %v669_v46, %v669_v46 }
 0x10d   : > { %v505_v49 = vpop.f32.mrb[16].mxu0  ;;  %v593_v50 = vpop.f32.mrb[16].mxu1 }
 0x10e   : > { %858 = vst.msk [vmem:[%s1429_s6 + $0x1c] sm:$0xf] %vm850_vm4, %v1055_v47  ;;  %880 = vst.msk [vmem:[%s1429_s6 + $0x74] sm:$0xf] %vm850_vm4, %v1077_v48  ;;  %v506_v51 = vadd.f32 %v1418_v31, %v505_v49  ;;  %v1144_v52 = vpop.f32.mrb[17].mxu0  ;;  %v594_v53 = vadd.f32 %v1418_v31, %v593_v50  ;;  %v1188_v54 = vpop.f32.mrb[17].mxu1 }
 0x10f   : > { %v508_v55 = vpop.f32.mrb[18].mxu0  ;;  %v596_v56 = vpop.f32.mrb[18].mxu1 }
 0x110   : > { %v648_v57 = vmax.f32 %v506_v51, 0.0  ;;  %v509_v58 = vadd.f32 %v1418_v31, %v508_v55  ;;  %v1145_v59 = vpop.f32.mrb[19].mxu0  ;;  %v670_v60 = vmax.f32 %v594_v53, 0.0  ;;  %v597_v61 = vadd.f32 %v1418_v31, %v596_v56  ;;  %v1189_v62 = vpop.f32.mrb[19].mxu1 }
 0x112   : > { %v1056_v63 = vpack.c.bf16 %v648_v57, %v648_v57  ;;  %v649_v0 = vmax.f32 %v509_v58, 0.0  ;;  %v1078_v1 = vpack.c.bf16 %v670_v60, %v670_v60  ;;  %v671_v2 = vmax.f32 %v597_v61, 0.0 }
 0x114   : > { %859 = vst.msk [vmem:[%s1429_s6 + $0x20] sm:$0xf] %vm850_vm4, %v1056_v63  ;;  %v1057_v3 = vpack.c.bf16 %v649_v0, %v649_v0  ;;  %881 = vst.msk [vmem:[%s1429_s6 + $0x78] sm:$0xf] %vm850_vm4, %v1078_v1  ;;  %v1079_v4 = vpack.c.bf16 %v671_v2, %v671_v2 }
 0x115   : > { %v513_v5 = vpop.f32.mrb[20].mxu0  ;;  %v601_v6 = vpop.f32.mrb[20].mxu1 }
 0x116   : > { %860 = vst.msk [vmem:[%s1429_s6 + $0x24] sm:$0xf] %vm850_vm4, %v1057_v3  ;;  %882 = vst.msk [vmem:[%s1429_s6 + $0x7c] sm:$0xf] %vm850_vm4, %v1079_v4  ;;  %v514_v7 = vadd.f32 %v1418_v31, %v513_v5  ;;  %v1148_v8 = vpop.f32.mrb[21].mxu0  ;;  %v602_v9 = vadd.f32 %v1418_v31, %v601_v6  ;;  %v1192_v10 = vpop.f32.mrb[21].mxu1 }
 0x117   : > { %v516_v11 = vpop.f32.mrb[22].mxu0  ;;  %v604_v12 = vpop.f32.mrb[22].mxu1 }
 0x118   : > { %v650_v13 = vmax.f32 %v514_v7, 0.0  ;;  %v517_v14 = vadd.f32 %v1418_v31, %v516_v11  ;;  %v1149_v15 = vpop.f32.mrb[23].mxu0  ;;  %v672_v16 = vmax.f32 %v602_v9, 0.0  ;;  %v605_v17 = vadd.f32 %v1418_v31, %v604_v12  ;;  %v1193_v18 = vpop.f32.mrb[23].mxu1 }
 0x11a   : > { %v1058_v19 = vpack.c.bf16 %v650_v13, %v650_v13  ;;  %v651_v20 = vmax.f32 %v517_v14, 0.0  ;;  %v1080_v21 = vpack.c.bf16 %v672_v16, %v672_v16  ;;  %v673_v22 = vmax.f32 %v605_v17, 0.0 }
 0x11c   : > { %861 = vst.msk [vmem:[%s1429_s6 + $0x28] sm:$0xf] %vm850_vm4, %v1058_v19  ;;  %v1059_v23 = vpack.c.bf16 %v651_v20, %v651_v20  ;;  %883 = vst.msk [vmem:[%s1429_s6 + $0x80] sm:$0xf] %vm850_vm4, %v1080_v21  ;;  %v1081_v24 = vpack.c.bf16 %v673_v22, %v673_v22 }
 0x11d   : > { %v521_v25 = vpop.f32.mrb[24].mxu0  ;;  %v609_v26 = vpop.f32.mrb[24].mxu1 }
 0x11e   : > { %862 = vst.msk [vmem:[%s1429_s6 + $0x2c] sm:$0xf] %vm850_vm4, %v1059_v23  ;;  %884 = vst.msk [vmem:[%s1429_s6 + $0x84] sm:$0xf] %vm850_vm4, %v1081_v24  ;;  %v522_v27 = vadd.f32 %v1418_v31, %v521_v25  ;;  %v1152_v28 = vpop.f32.mrb[25].mxu0  ;;  %v610_v29 = vadd.f32 %v1418_v31, %v609_v26  ;;  %v1196_v30 = vpop.f32.mrb[25].mxu1 }
 0x11f   : > { %v524_v32 = vpop.f32.mrb[26].mxu0  ;;  %v612_v33 = vpop.f32.mrb[26].mxu1 }
 0x120   : > { %v652_v34 = vmax.f32 %v522_v27, 0.0  ;;  %v525_v35 = vadd.f32 %v1418_v31, %v524_v32  ;;  %v1153_v36 = vpop.f32.mrb[27].mxu0  ;;  %v674_v37 = vmax.f32 %v610_v29, 0.0  ;;  %v613_v38 = vadd.f32 %v1418_v31, %v612_v33  ;;  %v1197_v39 = vpop.f32.mrb[27].mxu1 }
 0x122   : > { %v1060_v40 = vpack.c.bf16 %v652_v34, %v652_v34  ;;  %v653_v41 = vmax.f32 %v525_v35, 0.0  ;;  %v1082_v42 = vpack.c.bf16 %v674_v37, %v674_v37  ;;  %v675_v43 = vmax.f32 %v613_v38, 0.0 }
 0x124   : > { %863 = vst.msk [vmem:[%s1429_s6 + $0x30] sm:$0xf] %vm850_vm4, %v1060_v40  ;;  %v1061_v44 = vpack.c.bf16 %v653_v41, %v653_v41  ;;  %885 = vst.msk [vmem:[%s1429_s6 + $0x88] sm:$0xf] %vm850_vm4, %v1082_v42  ;;  %v1083_v45 = vpack.c.bf16 %v675_v43, %v675_v43 }
 0x125   : > { %v529_v46 = vpop.f32.mrb[28].mxu0  ;;  %v617_v47 = vpop.f32.mrb[28].mxu1 }
 0x126   : > { %864 = vst.msk [vmem:[%s1429_s6 + $0x34] sm:$0xf] %vm850_vm4, %v1061_v44  ;;  %886 = vst.msk [vmem:[%s1429_s6 + $0x8c] sm:$0xf] %vm850_vm4, %v1083_v45  ;;  %v530_v48 = vadd.f32 %v1418_v31, %v529_v46  ;;  %v1156_v49 = vpop.f32.mrb[29].mxu0  ;;  %v618_v50 = vadd.f32 %v1418_v31, %v617_v47  ;;  %v1200_v51 = vpop.f32.mrb[29].mxu1 }
 0x127   : > { %v532_v52 = vpop.f32.mrb[30].mxu0  ;;  %v620_v53 = vpop.f32.mrb[30].mxu1 }
 0x128   : > { %v654_v54 = vmax.f32 %v530_v48, 0.0  ;;  %v533_v55 = vadd.f32 %v1418_v31, %v532_v52  ;;  %v1157_v56 = vpop.f32.mrb[31].mxu0  ;;  %v676_v57 = vmax.f32 %v618_v50, 0.0  ;;  %v621_v58 = vadd.f32 %v1418_v31, %v620_v53  ;;  %v1201_v59 = vpop.f32.mrb[31].mxu1 }
 0x12a   : > { %v1062_v60 = vpack.c.bf16 %v654_v54, %v654_v54  ;;  %v655_v61 = vmax.f32 %v533_v55, 0.0  ;;  %v1084_v62 = vpack.c.bf16 %v676_v57, %v676_v57  ;;  %v677_v63 = vmax.f32 %v621_v58, 0.0 }
 0x12c   : > { %865 = vst.msk [vmem:[%s1429_s6 + $0x38] sm:$0xf] %vm850_vm4, %v1062_v60  ;;  %v1063_v0 = vpack.c.bf16 %v655_v61, %v655_v61  ;;  %887 = vst.msk [vmem:[%s1429_s6 + $0x90] sm:$0xf] %vm850_vm4, %v1084_v62  ;;  %v1085_v1 = vpack.c.bf16 %v677_v63, %v677_v63 }
 0x12d   : > { %v537_v2 = vpop.f32.mrb[32].mxu0  ;;  %v625_v3 = vpop.f32.mrb[32].mxu1 }
 0x12e   : > { %866 = vst.msk [vmem:[%s1429_s6 + $0x3c] sm:$0xf] %vm850_vm4, %v1063_v0  ;;  %888 = vst.msk [vmem:[%s1429_s6 + $0x94] sm:$0xf] %vm850_vm4, %v1085_v1  ;;  %v538_v4 = vadd.f32 %v1418_v31, %v537_v2  ;;  %v1160_v5 = vpop.f32.mrb[33].mxu0  ;;  %v626_v6 = vadd.f32 %v1418_v31, %v625_v3  ;;  %v1204_v7 = vpop.f32.mrb[33].mxu1 }
 0x12f   : > { %v540_v8 = vpop.f32.mrb[34].mxu0  ;;  %v628_v9 = vpop.f32.mrb[34].mxu1 }
 0x130   : > { %v656_v10 = vmax.f32 %v538_v4, 0.0  ;;  %v541_v11 = vadd.f32 %v1418_v31, %v540_v8  ;;  %v1161_v12 = vpop.f32.mrb[35].mxu0  ;;  %v678_v13 = vmax.f32 %v626_v6, 0.0  ;;  %v629_v14 = vadd.f32 %v1418_v31, %v628_v9  ;;  %v1205_v15 = vpop.f32.mrb[35].mxu1 }
 0x132   : > { %v1064_v16 = vpack.c.bf16 %v656_v10, %v656_v10  ;;  %v657_v17 = vmax.f32 %v541_v11, 0.0  ;;  %v1086_v18 = vpack.c.bf16 %v678_v13, %v678_v13  ;;  %v679_v19 = vmax.f32 %v629_v14, 0.0 }
 0x134   : > { %867 = vst.msk [vmem:[%s1429_s6 + $0x40] sm:$0xf] %vm850_vm4, %v1064_v16  ;;  %v1065_v20 = vpack.c.bf16 %v657_v17, %v657_v17  ;;  %889 = vst.msk [vmem:[%s1429_s6 + $0x98] sm:$0xf] %vm850_vm4, %v1086_v18  ;;  %v1087_v21 = vpack.c.bf16 %v679_v19, %v679_v19 }
 0x135   : > { %v545_v22 = vpop.f32.mrb[36].mxu0  ;;  %v633_v23 = vpop.f32.mrb[36].mxu1 }
 0x136   : > { %868 = vst.msk [vmem:[%s1429_s6 + $0x44] sm:$0xf] %vm850_vm4, %v1065_v20  ;;  %890 = vst.msk [vmem:[%s1429_s6 + $0x9c] sm:$0xf] %vm850_vm4, %v1087_v21  ;;  %v546_v24 = vadd.f32 %v1418_v31, %v545_v22  ;;  %v1164_v25 = vpop.f32.mrb[37].mxu0  ;;  %v634_v26 = vadd.f32 %v1418_v31, %v633_v23  ;;  %v1208_v27 = vpop.f32.mrb[37].mxu1 }
 0x137   : > { %v548_v28 = vpop.f32.mrb[38].mxu0  ;;  %v636_v29 = vpop.f32.mrb[38].mxu1 }
 0x138   : > { %v658_v30 = vmax.f32 %v546_v24, 0.0  ;;  %v549_v32 = vadd.f32 %v1418_v31, %v548_v28  ;;  %v1165_v33 = vpop.f32.mrb[39].mxu0  ;;  %v680_v34 = vmax.f32 %v634_v26, 0.0  ;;  %v637_v35 = vadd.f32 %v1418_v31, %v636_v29  ;;  %v1209_v36 = vpop.f32.mrb[39].mxu1 }
 0x13a   : > { %v1066_v37 = vpack.c.bf16 %v658_v30, %v658_v30  ;;  %v659_v38 = vmax.f32 %v549_v32, 0.0  ;;  %v1088_v39 = vpack.c.bf16 %v680_v34, %v680_v34  ;;  %v681_v40 = vmax.f32 %v637_v35, 0.0 }
 0x13c   : > { %869 = vst.msk [vmem:[%s1429_s6 + $0x48] sm:$0xf] %vm850_vm4, %v1066_v37  ;;  %v1067_v41 = vpack.c.bf16 %v659_v38, %v659_v38  ;;  %891 = vst.msk [vmem:[%s1429_s6 + $0xa0] sm:$0xf] %vm850_vm4, %v1088_v39  ;;  %v1089_v42 = vpack.c.bf16 %v681_v40, %v681_v40 }
 0x13d   : > { %v553_v43 = vpop.f32.mrb[40].mxu0 }
 0x13e   : > { %870 = vst.msk [vmem:[%s1429_s6 + $0x4c] sm:$0xf] %vm850_vm4, %v1067_v41  ;;  %892 = vst.msk [vmem:[%s1429_s6 + $0xa4] sm:$0xf] %vm850_vm4, %v1089_v42  ;;  %v554_v44 = vadd.f32 %v1418_v31, %v553_v43  ;;  %v1168_v45 = vpop.f32.mrb[41].mxu0 }
 0x13f   : > { %v556_v46 = vpop.f32.mrb[42].mxu0 }
 0x140   : > { %v660_v47 = vmax.f32 %v554_v44, 0.0  ;;  %v557_v48 = vadd.f32 %v1418_v31, %v556_v46  ;;  %v1169_v49 = vpop.f32.mrb[43].mxu0 }
 0x142   : > { %v1068_v50 = vpack.c.bf16 %v660_v47, %v660_v47  ;;  %v661_v51 = vmax.f32 %v557_v48, 0.0 }
 0x144   : > { %871 = vst.msk [vmem:[%s1429_s6 + $0x50] sm:$0xf] %vm850_vm4, %v1068_v50  ;;  %v1069_v52 = vpack.c.bf16 %v661_v51, %v661_v51 }
 0x146   : > { %872 = vst.msk [vmem:[%s1429_s6 + $0x54] sm:$0xf] %vm850_vm4, %v1069_v52 }
 0x147 PF: > { %s13_s12 = sadd.s32 1, %s1263_s12  }
 0x148   : > { %p10_p4 = scmp.ge.s32.totalorder %s13_s12, 4  }
 0x14a   :  { %12 = sbr.rel (!%p10_p4) target bundleno = 1 (0x1), region = 62 }

// kernel: encoder_forward.5
= control target key start
LH: loop header
LB: loop body
LE: loop exit
PB: predicated region body
PF: predicated region fallthrough
CT: control target
= control target key end

     0   :  { %v869_v0 = vmov 0   ;;  %vm375_vm0 = vcmask 130048   ;;  %vm639_vm1 = vcmask 257024   ;;  %vm652_vm2 = vcmask 253952   ;;  %s1128_s1 = inlined_call_operand.vmem [shape: bf16[400,32], index: 1, kind: input, shape index: {}]   ;;  %s1129_s0 = inlined_call_operand.vmem [shape: bf16[98,400], index: 0, kind: input, shape index: {}]   ;;  %s1130_s2 = inlined_call_operand.vmem [shape: f32[1,32], index: 2, kind: input, shape index: {}]   ;;  %s1131_s3 = inlined_call_operand.vmem [shape: bf16[98,32], index: 3, kind: output, shape index: {}]  }
   0x1   :  { %485 = vmatprep.subr.bf16.mxu1 %v869_v0  ;;  %v804_v1 = vld [vmem:[%s1128_s1 + $0x40] sm:$0xff]   ;;  %v807_v4 = vld [vmem:[%s1128_s1 + $0x48] sm:$0xff]   ;;  %v810_v7 = vld [vmem:[%s1128_s1 + $0x50] sm:$0xff]  }
   0x2   :  { %v805_v2 = vld [vmem:[%s1128_s1 + $0x80] sm:$0xff]   ;;  %745 = vmatprep.subr.bf16.mxu0 %v804_v1  ;;  %v808_v5 = vld [vmem:[%s1128_s1 + $0x88] sm:$0xff]   ;;  %v811_v8 = vld [vmem:[%s1128_s1 + $0x90] sm:$0xff]  }
   0x3   :  { %v806_v3 = vld [vmem:[%s1128_s1] sm:$0xff]   ;;  %486 = vmatpush1.bf16.msra.mxu1 %v805_v2  ;;  %v809_v6 = vld [vmem:[%s1128_s1 + $0x8] sm:$0xff]   ;;  %v812_v9 = vld [vmem:[%s1128_s1 + $0x10] sm:$0xff]  }
   0x4   :  { %746 = vmatpush3.bf16.msra.mxu0 %v806_v3  ;;  %487 = vmatprep.subr.bf16.mxu1 %v869_v0  ;;  %v813_v10 = vld [vmem:[%s1128_s1 + $0x58] sm:$0xff]   ;;  %v816_v13 = vld [vmem:[%s1128_s1 + $0x60] sm:$0xff]   ;;  %v819_v16 = vld [vmem:[%s1128_s1 + $0x68] sm:$0xff]  }
   0x5   :  { %747 = vmatprep.subr.bf16.mxu0 %v807_v4  ;;  %v814_v11 = vld [vmem:[%s1128_s1 + $0x98] sm:$0xff]   ;;  %v817_v14 = vld [vmem:[%s1128_s1 + $0xa0] sm:$0xff]   ;;  %v820_v17 = vld [vmem:[%s1128_s1 + $0xa8] sm:$0xff]  }
   0x6   :  { %v815_v12 = vld [vmem:[%s1128_s1 + $0x18] sm:$0xff]   ;;  %v818_v15 = vld [vmem:[%s1128_s1 + $0x20] sm:$0xff]   ;;  %v821_v18 = vld [vmem:[%s1128_s1 + $0x28] sm:$0xff]  }
   0x7   :  { %488 = vmatpush1.bf16.msra.mxu1 %v808_v5  ;;  %v822_v19 = vld [vmem:[%s1128_s1 + $0x70] sm:$0xff]   ;;  %v825_v22 = vld [vmem:[%s1128_s1 + $0x78] sm:$0xff]   ;;  %v831_v28 = vld [vmem:[%s1128_s1 + $0xc0] sm:$0xff]  }
   0x8   :  { %748 = vmatpush3.bf16.msra.mxu0 %v809_v6  ;;  %489 = vmatprep.subr.bf16.mxu1 %v869_v0  ;;  %v823_v20 = vld [vmem:[%s1128_s1 + $0xb0] sm:$0xff]   ;;  %v826_v24 = vld [vmem:[%s1128_s1 + $0xb8] sm:$0xff]   ;;  %v39_v48 = vld [vmem:[%s1129_s0 + $0xc0] sm:$0x11] }
   0x9   :  { %749 = vmatprep.subr.bf16.mxu0 %v810_v7  ;;  %v824_v21 = vld [vmem:[%s1128_s1 + $0x30] sm:$0xff]   ;;  %v834_v25 = vld [vmem:[%s1129_s0 + $0xc] ss:$16 sps:$4 sm:$0xff]   ;;  %v832_v30 = vld [vmem:[%s1129_s0 + $0x8] ss:$16 sps:$4 sm:$0xff]   ;;  %v684_v50 = vcombine.high %v39_v48, %v39_v48  ;;  %v683_v54 = vcombine.low %v39_v48, %v39_v48 }
   0xa   :  { %v830_v23 = vld [vmem:[%s1129_s0 + $0x4] ss:$16 sps:$4 sm:$0xff]   ;;  %v827_v26 = vld [vmem:[%s1128_s1 + $0x38] sm:$0xff]   ;;  %712 = vmatprep.mubr.msk.bf16.mxu1 %vm375_vm0, %v834_v25  ;;  %v828_v27 = vld [vmem:[%s1129_s0] ss:$16 sps:$4 sm:$0xff]  }
   0xb   :  { %490 = vmatpush1.bf16.msra.mxu1 %v811_v8  ;;  %429 = vmatprep.mubr.bf16.mxu0 %v830_v23  ;;  %v835_v29 = vld [vmem:[%s1129_s0 + $0x24] ss:$16 sps:$4 sm:$0xff]   ;;  %v838_v31 = vld [vmem:[%s1129_s0 + $0x2c] ss:$16 sps:$4 sm:$0xff]   ;;  %v837_v32 = vld [vmem:[%s1129_s0 + $0x20] ss:$16 sps:$4 sm:$0xff]  }
   0xc   :  { %750 = vmatpush3.bf16.msra.mxu0 %v812_v9  ;;  %491 = vmatprep.subr.bf16.mxu1 %v869_v0  ;;  %v841_v33 = vld [vmem:[%s1129_s0 + $0x44] ss:$16 sps:$4 sm:$0xff]   ;;  %v840_v34 = vld [vmem:[%s1129_s0 + $0x28] ss:$16 sps:$4 sm:$0xff]   ;;  %v844_v35 = vld [vmem:[%s1129_s0 + $0x4c] ss:$16 sps:$4 sm:$0xff]  }
   0xd   :  { %751 = vmatprep.subr.bf16.mxu0 %v813_v10  ;;  %v843_v36 = vld [vmem:[%s1129_s0 + $0x40] ss:$16 sps:$4 sm:$0xff]   ;;  %v847_v37 = vld [vmem:[%s1129_s0 + $0x64] ss:$16 sps:$4 sm:$0xff]   ;;  %v846_v38 = vld [vmem:[%s1129_s0 + $0x48] ss:$16 sps:$4 sm:$0xff]  }
   0xe   :  { %v850_v39 = vld [vmem:[%s1129_s0 + $0x6c] ss:$16 sps:$4 sm:$0xff]   ;;  %v849_v40 = vld [vmem:[%s1129_s0 + $0x60] ss:$16 sps:$4 sm:$0xff]   ;;  %v853_v41 = vld [vmem:[%s1129_s0 + $0x84] ss:$16 sps:$4 sm:$0xff]  }
   0xf   :  { %492 = vmatpush1.bf16.msra.mxu1 %v814_v11  ;;  %v852_v42 = vld [vmem:[%s1129_s0 + $0x68] ss:$16 sps:$4 sm:$0xff]   ;;  %v856_v43 = vld [vmem:[%s1129_s0 + $0x8c] ss:$16 sps:$4 sm:$0xff]   ;;  %v855_v44 = vld [vmem:[%s1129_s0 + $0x80] ss:$16 sps:$4 sm:$0xff]  }
  0x10   :  { %752 = vmatpush3.bf16.msra.mxu0 %v815_v12  ;;  %493 = vmatprep.subr.bf16.mxu1 %v869_v0  ;;  %v859_v45 = vld [vmem:[%s1129_s0 + $0xa4] ss:$16 sps:$4 sm:$0xff]   ;;  %v858_v46 = vld [vmem:[%s1129_s0 + $0x88] ss:$16 sps:$4 sm:$0xff]   ;;  %v862_v47 = vld [vmem:[%s1129_s0 + $0xac] ss:$16 sps:$4 sm:$0xff]  }
  0x11   :  { %753 = vmatprep.subr.bf16.mxu0 %v816_v13  ;;  %v861_v49 = vld [vmem:[%s1129_s0 + $0xa0] ss:$16 sps:$4 sm:$0xff]   ;;  %v40_v51 = vld [vmem:[%s1129_s0 + $0xc8] sm:$0x11] }
  0x12   :  { %v864_v52 = vld [vmem:[%s1129_s0 + $0xa8] ss:$16 sps:$4 sm:$0xff]   ;;  %v686_v53 = vcombine.high %v40_v51, %v40_v51  ;;  %v685_v55 = vcombine.low %v40_v51, %v40_v51  ;;  %v1062_v58 = vld [vmem:[%s1130_s2] ss:$0 sm:$0xff] }
  0x13   :  { %494 = vmatpush1.bf16.msra.mxu1 %v817_v14 }
  0x14   :  { %754 = vmatpush3.bf16.msra.mxu0 %v818_v15  ;;  %495 = vmatprep.subr.bf16.mxu1 %v869_v0 }
  0x15   :  { %755 = vmatprep.subr.bf16.mxu0 %v819_v16 }
  0x17   :  { %496 = vmatpush1.bf16.msra.mxu1 %v820_v17 }
  0x18   :  { %756 = vmatpush3.bf16.msra.mxu0 %v821_v18  ;;  %497 = vmatprep.subr.bf16.mxu1 %v869_v0 }
  0x19   :  { %757 = vmatprep.subr.bf16.mxu0 %v822_v19 }
  0x1b   :  { %498 = vmatpush1.bf16.msra.mxu1 %v823_v20 }
  0x1c   :  { %758 = vmatpush3.bf16.msra.mxu0 %v824_v21  ;;  %499 = vmatprep.subr.bf16.mxu1 %v869_v0 }
  0x1d   :  { %759 = vmatprep.subr.bf16.mxu0 %v825_v22 }
  0x1f   :  { %500 = vmatpush1.bf16.msra.mxu1 %v826_v24 }
  0x20   :  { %760 = vmatpush3.bf16.msra.mxu0 %v827_v26  ;;  %501 = vmatprep.subr.bf16.mxu1 %v869_v0 }
  0x23   :  { %430 = vmatmul.mubr.bf16.vlgmr.msra.gmra.mrb[0].mxu0 %v828_v27  ;;  %502 = vmatpush1.bf16.msra.mxu1 %v831_v28 }
  0x24   :  { %437 = vmatprep.mubr.bf16.mxu0 %v835_v29 }
  0x26   :  { %518 = vmatmul.mubr.bf16.vlgmr.msra.gmra.mrb[0].mxu1 %v832_v30 }
  0x27   :  { %713 = vmatprep.mubr.msk.bf16.mxu1 %vm375_vm0, %v838_v31 }
  0x2b   :  { %438 = vmatmul.mubr.bf16.gmra.mrb[4].mxu0 %v837_v32 }
  0x2c   :  { %445 = vmatprep.mubr.bf16.mxu0 %v841_v33 }
  0x2e   :  { %526 = vmatmul.mubr.bf16.gmra.mrb[4].mxu1 %v840_v34 }
  0x2f   :  { %714 = vmatprep.mubr.msk.bf16.mxu1 %vm375_vm0, %v844_v35 }
  0x33   :  { %446 = vmatmul.mubr.bf16.gmra.mrb[8].mxu0 %v843_v36 }
  0x34   :  { %453 = vmatprep.mubr.bf16.mxu0 %v847_v37 }
  0x36   :  { %534 = vmatmul.mubr.bf16.gmra.mrb[8].mxu1 %v846_v38 }
  0x37   :  { %715 = vmatprep.mubr.msk.bf16.mxu1 %vm375_vm0, %v850_v39 }
  0x3b   :  { %454 = vmatmul.mubr.bf16.gmra.mrb[12].mxu0 %v849_v40 }
  0x3c   :  { %461 = vmatprep.mubr.bf16.mxu0 %v853_v41 }
  0x3e   :  { %542 = vmatmul.mubr.bf16.gmra.mrb[12].mxu1 %v852_v42 }
  0x3f   :  { %716 = vmatprep.mubr.msk.bf16.mxu1 %vm375_vm0, %v856_v43 }
  0x43   :  { %462 = vmatmul.mubr.bf16.gmra.mrb[16].mxu0 %v855_v44 }
  0x44   :  { %469 = vmatprep.mubr.bf16.mxu0 %v859_v45 }
  0x46   :  { %550 = vmatmul.mubr.bf16.gmra.mrb[16].mxu1 %v858_v46 }
  0x47   :  { %717 = vmatprep.mubr.msk.bf16.mxu1 %vm375_vm0, %v862_v47 }
  0x4b   :  { %470 = vmatmul.mubr.bf16.gmra.mrb[20].mxu0 %v861_v49 }
  0x4c   :  { %477 = vmatprep.mubr.bf16.mxu0 %v684_v50 }
  0x4e   :  { %558 = vmatmul.mubr.bf16.gmra.mrb[20].mxu1 %v864_v52 }
  0x4f   :  { %718 = vmatprep.mubr.msk.bf16.mxu1 %vm375_vm0, %v686_v53 }
  0x53   :  { %478 = vmatmul.mubr.bf16.gmra.mrb[24].mxu0 %v683_v54 }
  0x56   :  { %566 = vmatmul.mubr.bf16.gmra.mrb[24].mxu1 %v685_v55 }
  0xf6   :  { %v761_v56 = vpop.f32.mrb[0].mxu0 }
  0xf7   :  { %v762_v57 = vpop.f32.mrb[1].mxu0 }
  0xf8   :  { %v763_v59 = vadd.f32 %v762_v57, %v761_v56  ;;  %v764_v60 = vpop.f32.mrb[2].mxu0 }
  0xf9   :  { %v765_v61 = vpop.f32.mrb[3].mxu0  ;;  %v519_v62 = vpop.f32.mrb[0].mxu1 }
  0xfa   :  { %v766_v63 = vadd.f32 %v765_v61, %v764_v60  ;;  %v432_v0 = vadd.f32 %v763_v59, %v1062_v58  ;;  %v521_v1 = vpop.f32.mrb[1].mxu1 }
  0xfb   :  { %v522_v2 = vpop.f32.mrb[2].mxu1 }
  0xfc   :  { %v520_v3 = vadd.f32 %v519_v62, %v432_v0  ;;  %v435_v4 = vadd.f32 %v766_v63, %v1062_v58  ;;  %v524_v5 = vpop.f32.mrb[3].mxu1 }
  0xfe   :  { %v573_v6 = vmax.f32 %v520_v3, 0.0  ;;  %v523_v7 = vadd.f32 %v522_v2, %v435_v4  ;;  %v767_v8 = vpop.f32.mrb[4].mxu0 }
  0xff   :  { %v768_v9 = vpop.f32.mrb[5].mxu0 }
 0x100   :  { %v732_v10 = vpack.c.bf16 %v573_v6, %v573_v6  ;;  %v574_v11 = vmax.f32 %v523_v7, 0.0  ;;  %v769_v12 = vadd.f32 %v768_v9, %v767_v8  ;;  %v770_v13 = vpop.f32.mrb[6].mxu0 }
 0x101   :  { %v771_v14 = vpop.f32.mrb[7].mxu0  ;;  %v527_v15 = vpop.f32.mrb[4].mxu1 }
 0x102   :  { %640 = vst.msk [vmem:[%s1131_s3] sm:$0xf] %vm639_vm1, %v732_v10  ;;  %v733_v16 = vpack.c.bf16 %v574_v11, %v574_v11  ;;  %v772_v17 = vadd.f32 %v771_v14, %v770_v13  ;;  %v440_v18 = vadd.f32 %v769_v12, %v1062_v58  ;;  %v529_v19 = vpop.f32.mrb[5].mxu1 }
 0x103   :  { %v530_v20 = vpop.f32.mrb[6].mxu1 }
 0x104   :  { %641 = vst.msk [vmem:[%s1131_s3 + $0x4] sm:$0xf] %vm639_vm1, %v733_v16  ;;  %v528_v21 = vadd.f32 %v527_v15, %v440_v18  ;;  %v443_v22 = vadd.f32 %v772_v17, %v1062_v58  ;;  %v532_v23 = vpop.f32.mrb[7].mxu1 }
 0x106   :  { %v575_v24 = vmax.f32 %v528_v21, 0.0  ;;  %v531_v25 = vadd.f32 %v530_v20, %v443_v22  ;;  %v773_v26 = vpop.f32.mrb[8].mxu0 }
 0x107   :  { %v774_v27 = vpop.f32.mrb[9].mxu0 }
 0x108   :  { %v734_v28 = vpack.c.bf16 %v575_v24, %v575_v24  ;;  %v576_v29 = vmax.f32 %v531_v25, 0.0  ;;  %v775_v30 = vadd.f32 %v774_v27, %v773_v26  ;;  %v776_v31 = vpop.f32.mrb[10].mxu0 }
 0x109   :  { %v777_v32 = vpop.f32.mrb[11].mxu0  ;;  %v535_v33 = vpop.f32.mrb[8].mxu1 }
 0x10a   :  { %642 = vst.msk [vmem:[%s1131_s3 + $0x8] sm:$0xf] %vm639_vm1, %v734_v28  ;;  %v735_v34 = vpack.c.bf16 %v576_v29, %v576_v29  ;;  %v778_v35 = vadd.f32 %v777_v32, %v776_v31  ;;  %v448_v36 = vadd.f32 %v775_v30, %v1062_v58  ;;  %v537_v37 = vpop.f32.mrb[9].mxu1 }
 0x10b   :  { %v538_v38 = vpop.f32.mrb[10].mxu1 }
 0x10c   :  { %643 = vst.msk [vmem:[%s1131_s3 + $0xc] sm:$0xf] %vm639_vm1, %v735_v34  ;;  %v536_v39 = vadd.f32 %v535_v33, %v448_v36  ;;  %v451_v40 = vadd.f32 %v778_v35, %v1062_v58  ;;  %v540_v41 = vpop.f32.mrb[11].mxu1 }
 0x10e   :  { %v577_v42 = vmax.f32 %v536_v39, 0.0  ;;  %v539_v43 = vadd.f32 %v538_v38, %v451_v40  ;;  %v779_v44 = vpop.f32.mrb[12].mxu0 }
 0x10f   :  { %v780_v45 = vpop.f32.mrb[13].mxu0 }
 0x110   :  { %v736_v46 = vpack.c.bf16 %v577_v42, %v577_v42  ;;  %v578_v47 = vmax.f32 %v539_v43, 0.0  ;;  %v781_v48 = vadd.f32 %v780_v45, %v779_v44  ;;  %v782_v49 = vpop.f32.mrb[14].mxu0 }
 0x111   :  { %v783_v50 = vpop.f32.mrb[15].mxu0  ;;  %v543_v51 = vpop.f32.mrb[12].mxu1 }
 0x112   :  { %644 = vst.msk [vmem:[%s1131_s3 + $0x10] sm:$0xf] %vm639_vm1, %v736_v46  ;;  %v737_v52 = vpack.c.bf16 %v578_v47, %v578_v47  ;;  %v784_v53 = vadd.f32 %v783_v50, %v782_v49  ;;  %v456_v54 = vadd.f32 %v781_v48, %v1062_v58  ;;  %v545_v55 = vpop.f32.mrb[13].mxu1 }
 0x113   :  { %v546_v56 = vpop.f32.mrb[14].mxu1 }
 0x114   :  { %645 = vst.msk [vmem:[%s1131_s3 + $0x14] sm:$0xf] %vm639_vm1, %v737_v52  ;;  %v544_v57 = vadd.f32 %v543_v51, %v456_v54  ;;  %v459_v59 = vadd.f32 %v784_v53, %v1062_v58  ;;  %v548_v60 = vpop.f32.mrb[15].mxu1 }
 0x116   :  { %v579_v61 = vmax.f32 %v544_v57, 0.0  ;;  %v547_v62 = vadd.f32 %v546_v56, %v459_v59  ;;  %v785_v63 = vpop.f32.mrb[16].mxu0 }
 0x117   :  { %v786_v0 = vpop.f32.mrb[17].mxu0 }
 0x118   :  { %v738_v1 = vpack.c.bf16 %v579_v61, %v579_v61  ;;  %v580_v2 = vmax.f32 %v547_v62, 0.0  ;;  %v787_v3 = vadd.f32 %v786_v0, %v785_v63  ;;  %v788_v4 = vpop.f32.mrb[18].mxu0 }
 0x119   :  { %v789_v5 = vpop.f32.mrb[19].mxu0  ;;  %v551_v6 = vpop.f32.mrb[16].mxu1 }
 0x11a   :  { %646 = vst.msk [vmem:[%s1131_s3 + $0x18] sm:$0xf] %vm639_vm1, %v738_v1  ;;  %v739_v7 = vpack.c.bf16 %v580_v2, %v580_v2  ;;  %v790_v8 = vadd.f32 %v789_v5, %v788_v4  ;;  %v464_v9 = vadd.f32 %v787_v3, %v1062_v58  ;;  %v553_v10 = vpop.f32.mrb[17].mxu1 }
 0x11b   :  { %v554_v11 = vpop.f32.mrb[18].mxu1 }
 0x11c   :  { %647 = vst.msk [vmem:[%s1131_s3 + $0x1c] sm:$0xf] %vm639_vm1, %v739_v7  ;;  %v552_v12 = vadd.f32 %v551_v6, %v464_v9  ;;  %v467_v13 = vadd.f32 %v790_v8, %v1062_v58  ;;  %v556_v14 = vpop.f32.mrb[19].mxu1 }
 0x11e   :  { %v581_v15 = vmax.f32 %v552_v12, 0.0  ;;  %v555_v16 = vadd.f32 %v554_v11, %v467_v13  ;;  %v791_v17 = vpop.f32.mrb[20].mxu0 }
 0x11f   :  { %v792_v18 = vpop.f32.mrb[21].mxu0 }
 0x120   :  { %v740_v19 = vpack.c.bf16 %v581_v15, %v581_v15  ;;  %v582_v20 = vmax.f32 %v555_v16, 0.0  ;;  %v793_v21 = vadd.f32 %v792_v18, %v791_v17  ;;  %v794_v22 = vpop.f32.mrb[22].mxu0 }
 0x121   :  { %v795_v23 = vpop.f32.mrb[23].mxu0  ;;  %v559_v24 = vpop.f32.mrb[20].mxu1 }
 0x122   :  { %648 = vst.msk [vmem:[%s1131_s3 + $0x20] sm:$0xf] %vm639_vm1, %v740_v19  ;;  %v741_v25 = vpack.c.bf16 %v582_v20, %v582_v20  ;;  %v796_v26 = vadd.f32 %v795_v23, %v794_v22  ;;  %v472_v27 = vadd.f32 %v793_v21, %v1062_v58  ;;  %v561_v28 = vpop.f32.mrb[21].mxu1 }
 0x123   :  { %v562_v29 = vpop.f32.mrb[22].mxu1 }
 0x124   :  { %649 = vst.msk [vmem:[%s1131_s3 + $0x24] sm:$0xf] %vm639_vm1, %v741_v25  ;;  %v560_v30 = vadd.f32 %v559_v24, %v472_v27  ;;  %v475_v31 = vadd.f32 %v796_v26, %v1062_v58  ;;  %v564_v32 = vpop.f32.mrb[23].mxu1 }
 0x126   :  { %v583_v33 = vmax.f32 %v560_v30, 0.0  ;;  %v563_v34 = vadd.f32 %v562_v29, %v475_v31  ;;  %v797_v35 = vpop.f32.mrb[24].mxu0 }
 0x127   :  { %v798_v36 = vpop.f32.mrb[25].mxu0 }
 0x128   :  { %v742_v37 = vpack.c.bf16 %v583_v33, %v583_v33  ;;  %v584_v38 = vmax.f32 %v563_v34, 0.0  ;;  %v799_v39 = vadd.f32 %v798_v36, %v797_v35  ;;  %v800_v40 = vpop.f32.mrb[26].mxu0 }
 0x129   :  { %v801_v41 = vpop.f32.mrb[27].mxu0  ;;  %v567_v42 = vpop.f32.mrb[24].mxu1 }
 0x12a   :  { %650 = vst.msk [vmem:[%s1131_s3 + $0x28] sm:$0xf] %vm639_vm1, %v742_v37  ;;  %v743_v43 = vpack.c.bf16 %v584_v38, %v584_v38  ;;  %v480_v44 = vadd.f32 %v799_v39, %v1062_v58  ;;  %v569_v45 = vpop.f32.mrb[25].mxu1 }
 0x12b   :  { %v570_v46 = vpop.f32.mrb[26].mxu1 }
 0x12c   :  { %651 = vst.msk [vmem:[%s1131_s3 + $0x2c] sm:$0xf] %vm639_vm1, %v743_v43  ;;  %v568_v47 = vadd.f32 %v567_v42, %v480_v44  ;;  %v571_v48 = vpop.f32.mrb[27].mxu1 }
 0x12e   :  { %v585_v49 = vmax.f32 %v568_v47, 0.0 }
 0x130   :  { %v744_v50 = vpack.c.bf16 %v585_v49, %v585_v49 }
 0x132   :  { %653 = vst.msk [vmem:[%s1131_s3 + $0x30] sm:$0x1] %vm652_vm2, %v744_v50 }

// kernel: encoder_forward.7
= control target key start
LH: loop header
LB: loop body
LE: loop exit
PB: predicated region body
PF: predicated region fallthrough
CT: control target
= control target key end

     0   :  { %v226_v1 = vmov 0.0   ;;  %vm227_vm0 = vmmov 0   ;;  %s291_s0 = inlined_call_operand.vmem [shape: bf16[2,128], index: 0, kind: input, shape index: {}]   ;;  %s292_s1 = inlined_call_operand.vmem [shape: bf16[128,32], index: 1, kind: input, shape index: {}]   ;;  %s293_s2 = inlined_call_operand.vmem [shape: f32[1,32], index: 2, kind: input, shape index: {}]   ;;  %s294_s3 = inlined_call_operand.hbm [shape: f32[2,32], index: 3, kind: output, shape index: {}]  }
   0x1   :  { %v192_v0 = vld [vmem:[%s292_s1] sm:$0xff]   ;;  %169 = vmatprep.subr.bf16.mxu0 %v226_v1  ;;  %v193_v2 = vld [vmem:[%s292_s1 + $0x8] sm:$0xff]   ;;  %185 = vmatprep.mubr.msk.bf16.mxu0 %vm227_vm0, %v226_v1  ;;  %v194_v3 = vld [vmem:[%s292_s1 + $0x10] sm:$0xff]  }
   0x2   :  { %170 = vmatpush3.bf16.msra.mxu0 %v192_v0 }
   0x3   :  { %171 = vmatprep.subr.bf16.mxu0 %v226_v1 }
   0x6   :  { %172 = vmatpush3.bf16.msra.mxu0 %v193_v2 }
   0x7   :  { %173 = vmatprep.subr.bf16.mxu0 %v226_v1 }
   0x8   :  { %8 = vsyncpa [#allocation3], 0  ;;  %v195_v4 = vld [vmem:[%s292_s1 + $0x18] sm:$0xff]   ;;  %v196_v5 = vld [vmem:[%s292_s1 + $0x20] sm:$0xff]   ;;  %vm129_vm1 = vcmask 254976  }
   0x9   :  { %v197_v6 = vld [vmem:[%s292_s1 + $0x28] sm:$0xff]   ;;  %v198_v7 = vld [vmem:[%s292_s1 + $0x30] sm:$0xff]   ;;  %v199_v8 = vld [vmem:[%s292_s1 + $0x38] sm:$0xff]   ;;  %s228_s1 = smov [#allocation2]  }
   0xa   :  { %174 = vmatpush3.bf16.msra.mxu0 %v194_v3  ;;  %v16_v9 = vld [vmem:[%s291_s0] sm:$0x1]  ;;  %s143_s5 = sshll.u32 %s228_s1, 4  ;;  %s144_s5 = int_to_ptr.vmem [resolvable:$true] %s143_s5 }
   0xb   :  { %175 = vmatprep.subr.bf16.mxu0 %v226_v1  ;;  %v151_v10 = vld [vmem:[%s293_s2] ss:$0 sm:$0xff]  ;;  %s202_s0 = scalar_lea.vmem %s144_s5, 32  ;;  %p207_p1 = scmp.lt.s32.totalorder %s144_s5, %s144_s5 }
   0xc   :  { %p203_p0 = scmp.ne.s32.totalorder %s144_s5, %s202_s0  ;;  %p208_p2 = scmp.lt.s32.totalorder %s202_s0, %s202_s0 }
   0xe   :  { %176 = vmatpush3.bf16.msra.mxu0 %v195_v4  ;;  %p209_p3 = por %p208_p2, %p207_p1 }
   0xf   :  { %177 = vmatprep.subr.bf16.mxu0 %v226_v1 }
  0x10   :  { %p210_p4 = pnand %p209_p3, %p203_p0 }
  0x12   :  { %178 = vmatpush3.bf16.msra.mxu0 %v196_v5 }
  0x13   :  { %179 = vmatprep.subr.bf16.mxu0 %v226_v1 }
  0x16   :  { %180 = vmatpush3.bf16.msra.mxu0 %v197_v6 }
  0x17   :  { %181 = vmatprep.subr.bf16.mxu0 %v226_v1 }
  0x1a   :  { %182 = vmatpush3.bf16.msra.mxu0 %v198_v7 }
  0x1b   :  { %183 = vmatprep.subr.bf16.mxu0 %v226_v1 }
  0x1e   :  { %184 = vmatpush3.bf16.msra.mxu0 %v199_v8 }
  0x21   :  { %186 = vmatmul.mubr.bf16.vlgmr.msra.gmra.mrb[0].mxu0 %v16_v9 }
  0xf4   :  { %v122_v11 = vpop.f32.mrb[0].mxu0 }
  0xf5   :  { %v123_v12 = vadd.f32 %v151_v10, %v122_v11  ;;  %v187_v13 = vpop.f32.mrb[1].mxu0 }
  0xf6   :  { %v125_v14 = vpop.f32.mrb[2].mxu0 }
  0xf7   :  { %v188_v15 = vpop.f32.mrb[3].mxu0  ;;  %v128_v16 = vmul.f32 %v123_v12, %v123_v12 }
  0xf9   :  { %v130_v17 = vsel %vm129_vm1, %v128_v16, 0.0 }
  0xfa   :  { %131 = vadd.xlane.f32.xlu0 %v130_v17 }
 0x187   :  { %v132_v18 = vpop.xlane.xlu0 %131 }
 0x188   :  { %v133_v19 = vadd.f32 1e-12, %v132_v18 }
 0x18a   :  { %200 = vrsqrt.f32 %v133_v19 }
 0x194   :  { %v201_v20 = vpop.eup %200 }
 0x195   :  { %v135_v21 = vmul.f32 %v201_v20, %v123_v12 }
 0x197   :  { %136 = vst.msk [vmem:[#allocation2] sm:$0x3] %vm129_vm1, %v135_v21 }
 0x198   :  { %213 = shalt.err (!%p210_p4)
}
 0x199   :  { %s214_s7 = scalar_lea.hbm %s294_s3, 32 }
 0x19a   :  { %p215_p5 = scmp.ne.s32.totalorder %s294_s3, %s214_s7  ;;  %p218_p6 = scmp.lt.u32.totalorder %s214_s7, %s294_s3 }
 0x19c   :  { %p220_p7 = pnand %p218_p6, %p215_p5 }
 0x19e   :  { %223 = shalt.err (!%p220_p7)
}
 0x19f   :  { %146 = dma.vmem_to_hbm [thread:$0]  %s144_s5, 32, %s294_s3, [#allocation3]  }
 0x1a0   :  { %224 = dma.done.wait [#allocation3], 32  }
 0x1a1   :  { %225 = vsyncadd [#allocation3], 4294967264 }
 0x1a2   :  { %150 = vsyncpa [#allocation3], 1 }

// kernel: encoder_forward.6
= control target key start
LH: loop header
LB: loop body
LE: loop exit
PB: predicated region body
PF: predicated region fallthrough
CT: control target
= control target key end

     0   :  { %v817_v41 = vmov 0.0   ;;  %vm818_vm0 = vmmov 0   ;;  %vm450_vm1 = vcmask 261120   ;;  %vm616_vm2 = vcmask 257024   ;;  %s1007_s1 = inlined_call_operand.vmem [shape: bf16[800,32], index: 1, kind: input, shape index: {}]   ;;  %s1008_s0 = inlined_call_operand.vmem [shape: bf16[8,800], index: 0, kind: input, shape index: {}]   ;;  %s1009_s2 = inlined_call_operand.vmem [shape: f32[1,32], index: 2, kind: input, shape index: {}]   ;;  %s1010_s3 = inlined_call_operand.vmem [shape: bf16[8,32], index: 3, kind: output, shape index: {}]  }
   0x1   :  { %v760_v0 = vld [vmem:[%s1007_s1 + $0x40] sm:$0xff]   ;;  %v764_v4 = vld [vmem:[%s1007_s1 + $0x48] sm:$0xff]   ;;  %v768_v8 = vld [vmem:[%s1007_s1 + $0x50] sm:$0xff]  }
   0x2   :  { %v761_v1 = vld [vmem:[%s1007_s1] sm:$0xff]   ;;  %681 = vmatprep.subr.bf16.mxu0 %v760_v0  ;;  %v765_v5 = vld [vmem:[%s1007_s1 + $0x8] sm:$0xff]   ;;  %v769_v9 = vld [vmem:[%s1007_s1 + $0x10] sm:$0xff]  }
   0x3   :  { %v762_v2 = vld [vmem:[%s1007_s1 + $0xc0] sm:$0xff]   ;;  %682 = vmatpush3.bf16.msra.mxu0 %v761_v1  ;;  %v766_v6 = vld [vmem:[%s1007_s1 + $0xc8] sm:$0xff]   ;;  %v770_v10 = vld [vmem:[%s1007_s1 + $0xd0] sm:$0xff]  }
   0x4   :  { %v763_v3 = vld [vmem:[%s1007_s1 + $0x80] sm:$0xff]   ;;  %703 = vmatprep.subr.bf16.mxu1 %v762_v2  ;;  %683 = vmatprep.subr.bf16.mxu0 %v764_v4  ;;  %v767_v7 = vld [vmem:[%s1007_s1 + $0x88] sm:$0xff]   ;;  %v771_v11 = vld [vmem:[%s1007_s1 + $0x90] sm:$0xff]  }
   0x5   :  { %704 = vmatpush3.bf16.msra.mxu1 %v763_v3  ;;  %v772_v12 = vld [vmem:[%s1007_s1 + $0x58] sm:$0xff]   ;;  %v776_v16 = vld [vmem:[%s1007_s1 + $0x60] sm:$0xff]   ;;  %v780_v20 = vld [vmem:[%s1007_s1 + $0x68] sm:$0xff]  }
   0x6   :  { %705 = vmatprep.subr.bf16.mxu1 %v766_v6  ;;  %v773_v13 = vld [vmem:[%s1007_s1 + $0x18] sm:$0xff]   ;;  %v777_v17 = vld [vmem:[%s1007_s1 + $0x20] sm:$0xff]   ;;  %v781_v21 = vld [vmem:[%s1007_s1 + $0x28] sm:$0xff]  }
   0x7   :  { %684 = vmatpush3.bf16.msra.mxu0 %v765_v5  ;;  %v774_v14 = vld [vmem:[%s1007_s1 + $0xd8] sm:$0xff]   ;;  %v778_v18 = vld [vmem:[%s1007_s1 + $0xe0] sm:$0xff]   ;;  %v782_v22 = vld [vmem:[%s1007_s1 + $0xe8] sm:$0xff]  }
   0x8   :  { %685 = vmatprep.subr.bf16.mxu0 %v768_v8  ;;  %v775_v15 = vld [vmem:[%s1007_s1 + $0x98] sm:$0xff]   ;;  %v779_v19 = vld [vmem:[%s1007_s1 + $0xa0] sm:$0xff]   ;;  %v783_v23 = vld [vmem:[%s1007_s1 + $0xa8] sm:$0xff]  }
   0x9   :  { %706 = vmatpush3.bf16.msra.mxu1 %v767_v7  ;;  %v784_v24 = vld [vmem:[%s1007_s1 + $0x70] sm:$0xff]   ;;  %v788_v28 = vld [vmem:[%s1007_s1 + $0x78] sm:$0xff]   ;;  %v15_v31 = vld [vmem:[%s1008_s0] sm:$0xff] }
   0xa   :  { %707 = vmatprep.subr.bf16.mxu1 %v770_v10  ;;  %v785_v25 = vld [vmem:[%s1007_s1 + $0x30] sm:$0xff]   ;;  %v789_v29 = vld [vmem:[%s1007_s1 + $0x38] sm:$0xff]   ;;  %v623_v32 = vcombine.low %v15_v31, %v15_v31  ;;  %v624_v33 = vcombine.high %v15_v31, %v15_v31  ;;  %v795_v35 = vld [vmem:[%s1007_s1 + $0x140] sm:$0xff]  }
   0xb   :  { %686 = vmatpush3.bf16.msra.mxu0 %v769_v9  ;;  %v786_v26 = vld [vmem:[%s1007_s1 + $0xf0] sm:$0xff]   ;;  %v790_v30 = vld [vmem:[%s1007_s1 + $0xf8] sm:$0xff]   ;;  %v16_v36 = vld [vmem:[%s1008_s0 + $0x8] sm:$0xff] }
   0xc   :  { %687 = vmatprep.subr.bf16.mxu0 %v772_v12  ;;  %v787_v27 = vld [vmem:[%s1007_s1 + $0xb0] sm:$0xff]   ;;  %v794_v34 = vld [vmem:[%s1007_s1 + $0xb8] sm:$0xff]   ;;  %486 = vmatprep.mubr.bf16.mxu0 %v624_v33  ;;  %v625_v37 = vcombine.low %v16_v36, %v16_v36  ;;  %v626_v38 = vcombine.high %v16_v36, %v16_v36  ;;  %v798_v39 = vld [vmem:[%s1007_s1 + $0x100] sm:$0xff]  }
   0xd   :  { %708 = vmatpush3.bf16.msra.mxu1 %v771_v11  ;;  %v799_v40 = vld [vmem:[%s1007_s1 + $0x148] sm:$0xff]   ;;  %v801_v43 = vld [vmem:[%s1007_s1 + $0x150] sm:$0xff]   ;;  %v803_v45 = vld [vmem:[%s1007_s1 + $0x158] sm:$0xff]  }
   0xe   :  { %709 = vmatprep.subr.bf16.mxu1 %v774_v14  ;;  %526 = vmatprep.mubr.bf16.mxu1 %v626_v38  ;;  %v800_v42 = vld [vmem:[%s1007_s1 + $0x108] sm:$0xff]   ;;  %v802_v44 = vld [vmem:[%s1007_s1 + $0x110] sm:$0xff]   ;;  %v804_v46 = vld [vmem:[%s1007_s1 + $0x118] sm:$0xff]  }
   0xf   :  { %688 = vmatpush3.bf16.msra.mxu0 %v773_v13  ;;  %v805_v47 = vld [vmem:[%s1007_s1 + $0x160] sm:$0xff]   ;;  %v807_v50 = vld [vmem:[%s1007_s1 + $0x168] sm:$0xff]   ;;  %v17_v51 = vld [vmem:[%s1008_s0 + $0x10] sm:$0xff] }
  0x10   :  { %689 = vmatprep.subr.bf16.mxu0 %v776_v16  ;;  %v811_v48 = vld [vmem:[%s1007_s1 + $0x180] sm:$0xff]   ;;  %v628_v52 = vcombine.high %v17_v51, %v17_v51  ;;  %v816_v53 = vld [vmem:[%s1007_s1 + $0x188] sm:$0xff]   ;;  %v793_v54 = vld [vmem:[%s1008_s0 + $0x18] ss:$0 sps:$4 sm:$0xff]   ;;  %v627_v60 = vcombine.low %v17_v51, %v17_v51 }
  0x11   :  { %710 = vmatpush3.bf16.msra.mxu1 %v775_v15  ;;  %v806_v49 = vld [vmem:[%s1007_s1 + $0x120] sm:$0xff]   ;;  %v808_v55 = vld [vmem:[%s1007_s1 + $0x128] sm:$0xff]   ;;  %v809_v56 = vld [vmem:[%s1007_s1 + $0x170] sm:$0xff]  }
  0x12   :  { %711 = vmatprep.subr.bf16.mxu1 %v778_v18  ;;  %v810_v57 = vld [vmem:[%s1007_s1 + $0x130] sm:$0xff]   ;;  %v812_v58 = vld [vmem:[%s1007_s1 + $0x178] sm:$0xff]   ;;  %v622_v62 = vld [vmem:[%s1009_s2] ss:$0 sm:$0xff] }
  0x13   :  { %690 = vmatpush3.bf16.msra.mxu0 %v777_v17  ;;  %v813_v59 = vld [vmem:[%s1007_s1 + $0x138] sm:$0xff]  }
  0x14   :  { %691 = vmatprep.subr.bf16.mxu0 %v780_v20 }
  0x15   :  { %712 = vmatpush3.bf16.msra.mxu1 %v779_v19 }
  0x16   :  { %713 = vmatprep.subr.bf16.mxu1 %v782_v22 }
  0x17   :  { %692 = vmatpush3.bf16.msra.mxu0 %v781_v21 }
  0x18   :  { %693 = vmatprep.subr.bf16.mxu0 %v784_v24 }
  0x19   :  { %714 = vmatpush3.bf16.msra.mxu1 %v783_v23 }
  0x1a   :  { %715 = vmatprep.subr.bf16.mxu1 %v786_v26 }
  0x1b   :  { %694 = vmatpush3.bf16.msra.mxu0 %v785_v25 }
  0x1c   :  { %695 = vmatprep.subr.bf16.mxu0 %v788_v28 }
  0x1d   :  { %716 = vmatpush3.bf16.msra.mxu1 %v787_v27 }
  0x1e   :  { %717 = vmatprep.subr.bf16.mxu1 %v790_v30 }
  0x1f   :  { %696 = vmatpush3.bf16.msra.mxu0 %v789_v29 }
  0x20   :  { %725 = vmatprep.subr.bf16.mxu0 %v795_v35 }
  0x21   :  { %718 = vmatpush3.bf16.msra.mxu1 %v794_v34 }
  0x22   :  { %487 = vmatmul.mubr.bf16.vlgmr.msra.gmra.mrb[0].mxu0 %v623_v32  ;;  %750 = vmatprep.subr.bf16.mxu1 %v817_v41 }
  0x23   :  { %726 = vmatpush3.bf16.msra.mxu0 %v798_v39  ;;  %566 = vmatprep.mubr.bf16.mxu0 %v628_v52 }
  0x24   :  { %527 = vmatmul.mubr.bf16.vlgmr.msra.gmra.mrb[0].mxu1 %v625_v37  ;;  %727 = vmatprep.subr.bf16.mxu0 %v799_v40 }
  0x25   :  { %754 = vmatprep.mubr.msk.bf16.mxu1 %vm818_vm0, %v817_v41  ;;  %751 = vmatpush3.bf16.msra.mxu1 %v811_v48 }
  0x26   :  { %752 = vmatprep.subr.bf16.mxu1 %v817_v41 }
  0x27   :  { %728 = vmatpush3.bf16.msra.mxu0 %v800_v42 }
  0x28   :  { %729 = vmatprep.subr.bf16.mxu0 %v801_v43 }
  0x29   :  { %753 = vmatpush3.bf16.msra.mxu1 %v816_v53 }
  0x2b   :  { %730 = vmatpush3.bf16.msra.mxu0 %v802_v44 }
  0x2c   :  { %731 = vmatprep.subr.bf16.mxu0 %v803_v45  ;;  %755 = vmatmul.mubr.msk.bf16.vlgmr.msra.gmra.mrb[4].mxu1 %vm450_vm1, %v793_v54 }
  0x2f   :  { %732 = vmatpush3.bf16.msra.mxu0 %v804_v46 }
  0x30   :  { %733 = vmatprep.subr.bf16.mxu0 %v805_v47 }
  0x33   :  { %734 = vmatpush3.bf16.msra.mxu0 %v806_v49 }
  0x34   :  { %735 = vmatprep.subr.bf16.mxu0 %v807_v50 }
  0x37   :  { %736 = vmatpush3.bf16.msra.mxu0 %v808_v55 }
  0x38   :  { %737 = vmatprep.subr.bf16.mxu0 %v809_v56 }
  0x3b   :  { %738 = vmatpush3.bf16.msra.mxu0 %v810_v57 }
  0x3c   :  { %739 = vmatprep.subr.bf16.mxu0 %v812_v58 }
  0x3f   :  { %740 = vmatpush3.bf16.msra.mxu0 %v813_v59 }
  0x42   :  { %567 = vmatmul.mubr.bf16.vlgmr.msra.gmra.mrb[4].mxu0 %v627_v60 }
  0xf5   :  { %v697_v61 = vpop.f32.mrb[0].mxu0 }
  0xf6   :  { %v698_v63 = vpop.f32.mrb[1].mxu0 }
  0xf7   :  { %v699_v0 = vadd.f32 %v698_v63, %v697_v61  ;;  %v700_v1 = vpop.f32.mrb[2].mxu0  ;;  %v719_v2 = vpop.f32.mrb[0].mxu1 }
  0xf8   :  { %v701_v3 = vpop.f32.mrb[3].mxu0  ;;  %v720_v5 = vpop.f32.mrb[1].mxu1 }
  0xf9   :  { %v489_v4 = vadd.f32 %v699_v0, %v622_v62  ;;  %v721_v6 = vadd.f32 %v720_v5, %v719_v2  ;;  %v722_v7 = vpop.f32.mrb[2].mxu1 }
  0xfa   :  { %v723_v8 = vpop.f32.mrb[3].mxu1 }
  0xfb   :  { %v529_v9 = vadd.f32 %v721_v6, %v489_v4 }
  0xff   :  { %v608_v10 = vpop.f32.mrb[4].mxu1 }
 0x100   :  { %v756_v11 = vpop.f32.mrb[5].mxu1 }
 0x101   :  { %v611_v12 = vpop.f32.mrb[6].mxu1 }
 0x102   :  { %v757_v13 = vpop.f32.mrb[7].mxu1 }
 0x115   :  { %v741_v14 = vpop.f32.mrb[4].mxu0 }
 0x116   :  { %v742_v15 = vpop.f32.mrb[5].mxu0 }
 0x117   :  { %v743_v16 = vadd.f32 %v742_v15, %v741_v14  ;;  %v744_v17 = vpop.f32.mrb[6].mxu0 }
 0x118   :  { %v745_v18 = vpop.f32.mrb[7].mxu0 }
 0x119   :  { %v569_v19 = vadd.f32 %v743_v16, %v529_v9 }
 0x11b   :  { %v609_v20 = vadd.f32 %v608_v10, %v569_v19 }
 0x11d   :  { %v614_v21 = vmax.f32 %v609_v20, 0.0 }
 0x11f   :  { %v615_v22 = vpack.c.bf16 %v614_v21, %v614_v21 }
 0x121   :  { %617 = vst.msk [vmem:[%s1010_s3] sm:$0xf] %vm616_vm2, %v615_v22 }

</bundles_post_ra>
